<compile_context>
chip_gen: v7x
topology: tpu7x:2x2x1
jax: 0.10.0
libtpu: 0.0.40
codegen_flags: <defaults>
</compile_context>

<pallas_src>
import jax
import jax.numpy as jnp
from jax.experimental import pallas as pl
from jax.experimental.pallas import tpu as pltpu

# ---------------- model sizes ------------------------------------------------
B, C_IN, H, W = 2, 4, 16, 16          # input image (NCHW in PyTorch land)
C_CONV = 32                           # backbone output channels == fc.in_features
IN_FEATURES = C_CONV
HIDDEN = 512
NUM_CLASSES = 10
KH = KW = 3
K_PATCH = KH * KW * C_IN              # 36
ROWS = B * H * W                      # 512 conv-output rows
POOL_ROWS = ROWS // 4                 # 128 rows after 2x2 maxpool
OUT_PAD = 128                         # lane-dense padded logits width
ROW_PAD = 8                           # sublane-aligned padded batch rows


# ---------------- fused Pallas kernel ----------------------------------------
def _fused_kernel(p_ref, wc_ref, bc_ref, pool_ref,
                  w1_ref, b1_ref, w2_ref, b2_ref, w3_ref, b3_ref, o_ref):
    # ---- conv as im2col matmul + bias + ReLU:  (512,36) @ (36,32) ----------
    conv = jnp.dot(p_ref[...], wc_ref[...], preferred_element_type=jnp.float32)
    conv = jnp.maximum(conv + bc_ref[...], 0.0)                    # (512, 32)

    # ---- MaxPool2d(2): rows were pre-ordered so the four members of every
    #      2x2 window live in four sublane-aligned 128-row chunks ------------
    mp = jnp.maximum(
        jnp.maximum(conv[0:128, :], conv[128:256, :]),
        jnp.maximum(conv[256:384, :], conv[384:512, :]))           # (128, 32)

    # ---- global average pool via constant pooling matrix (MXU) -------------
    # pool_ref: (8,128), rows 0..B-1 hold 1/64 over their image's rows.
    feats = jnp.dot(pool_ref[...], mp,
                    preferred_element_type=jnp.float32)            # (8, 32)

    # ---- classifier: Linear -> ReLU -> (Dropout=id) -> Linear -> ReLU
    #      -> (Dropout=id) -> Linear   (bf16 weights, f32 accumulation) ------
    h1 = jnp.dot(feats.astype(jnp.bfloat16), w1_ref[...],
                 preferred_element_type=jnp.float32)
    h1 = jnp.maximum(h1 + b1_ref[...], 0.0)                        # (8, 512) f32
    h2 = jnp.dot(h1.astype(jnp.bfloat16), w2_ref[...],
                 preferred_element_type=jnp.float32)
    h2 = jnp.maximum(h2 + b2_ref[...], 0.0)                        # (8, 512) f32
    o_ref[...] = (jnp.dot(h2.astype(jnp.bfloat16), w3_ref[...],
                          preferred_element_type=jnp.float32)
                  + b3_ref[...])                                   # (8, 128) f32


def _full_spec(shape):
    # full-array block (tiny model -> single block, grid=(1,))
    return pl.BlockSpec(shape, lambda i: tuple(0 for _ in shape))


def fused_forward_call(patches, params):
    return pl.pallas_call(
        _fused_kernel,
        out_shape=jax.ShapeDtypeStruct((ROW_PAD, OUT_PAD), jnp.float32),
        grid=(1,),
        in_specs=[
            _full_spec((ROWS, K_PATCH)),
            _full_spec((K_PATCH, C_CONV)), _full_spec((1, C_CONV)),
            _full_spec((ROW_PAD, POOL_ROWS)),
            _full_spec((IN_FEATURES, HIDDEN)), _full_spec((1, HIDDEN)),
            _full_spec((HIDDEN, HIDDEN)), _full_spec((1, HIDDEN)),
            _full_spec((HIDDEN, OUT_PAD)), _full_spec((1, OUT_PAD)),
        ],
        out_specs=_full_spec((ROW_PAD, OUT_PAD)),
        compiler_params=pltpu.CompilerParams(
            dimension_semantics=("arbitrary",)),
    )(patches, params["wc"], params["bc"], params["pool"],
      params["w1"], params["b1"], params["w2"], params["b2"],
      params["w3p"], params["b3p"])


# ---------------- JAX glue: im2col with pooling-friendly row order -----------
def im2col_3x3_pad1_pool_order(x_nchw):
    # NCHW -> NHWC, pad=1, 3x3 patches; rows reordered so that
    #   row = (hr*2 + wr)*128 + (b*64 + h2*8 + w2),  h = 2*h2+hr, w = 2*w2+wr.
    x = jnp.transpose(x_nchw, (0, 2, 3, 1))                        # (B,H,W,C)
    xp = jnp.pad(x, ((0, 0), (1, 1), (1, 1), (0, 0)))
    cols = []
    for dh in range(KH):
        for dw in range(KW):
            cols.append(xp[:, dh:dh + H, dw:dw + W, :])            # (B,H,W,C)
    patches = jnp.concatenate(cols, axis=-1)                       # (B,H,W,36)
    patches = patches.reshape(B, H // 2, 2, W // 2, 2, K_PATCH)    # b,h2,hr,w2,wr,k
    patches = jnp.transpose(patches, (2, 4, 0, 1, 3, 5))           # hr,wr,b,h2,w2,k
    return patches.reshape(ROWS, K_PATCH)                          # (512, 36)


def self_car_driving_forward(x_nchw, params):
    patches = im2col_3x3_pad1_pool_order(x_nchw)
    out_pad = fused_forward_call(patches, params)                  # (8, 128)
    return out_pad[:B, :NUM_CLASSES]                               # (2, 10)


# ---------------- parameter setup --------------------------------------------
def init_params(key):
    ks = jax.random.split(key, 8)

    def lin(k, fan_in, shape):
        return jax.random.normal(k, shape, jnp.float32) / jnp.sqrt(fan_in)

    # global-average-pool matrix: (8,128), rows >= B are zero padding
    row_ids = jnp.arange(ROW_PAD)[:, None]
    col_ids = jnp.arange(POOL_ROWS)[None, :]
    pool = jnp.where((col_ids // (POOL_ROWS // B)) == row_ids,
                     1.0 / (POOL_ROWS // B), 0.0).astype(jnp.float32)

    w3 = lin(ks[5], HIDDEN, (HIDDEN, NUM_CLASSES))
    b3 = 0.01 * jax.random.normal(ks[6], (1, NUM_CLASSES), jnp.float32)
    w3p = jnp.pad(w3, ((0, 0), (0, OUT_PAD - NUM_CLASSES)))
    b3p = jnp.pad(b3, ((0, 0), (0, OUT_PAD - NUM_CLASSES)))

    return {
        # conv weight flattened (kh,kw,c_in) -> (36, 32); conv path stays f32
        "wc": lin(ks[0], K_PATCH, (K_PATCH, C_CONV)),
        "bc": jnp.zeros((1, C_CONV), jnp.float32),
        "pool": pool,
        # classifier weights in bf16 (HBM-traffic / MXU win); biases f32
        "w1": lin(ks[1], IN_FEATURES, (IN_FEATURES, HIDDEN)).astype(jnp.bfloat16),
        "b1": 0.01 * jax.random.normal(ks[2], (1, HIDDEN), jnp.float32),
        "w2": lin(ks[3], HIDDEN, (HIDDEN, HIDDEN)).astype(jnp.bfloat16),
        "b2": 0.01 * jax.random.normal(ks[4], (1, HIDDEN), jnp.float32),
        "w3p": w3p.astype(jnp.bfloat16),
        "b3p": b3p,
    }


if __name__ == "__main__":
    key = jax.random.PRNGKey(0)
    kx, kp = jax.random.split(key)
    x = jax.random.normal(kx, (B, C_IN, H, W), jnp.float32)   # NCHW like PyTorch
    params = init_params(kp)

    logits = jax.jit(self_car_driving_forward)(x, params)
    logits = jax.block_until_ready(logits)
    assert logits.shape == (B, NUM_CLASSES) and logits.dtype == jnp.float32
    print("KERNEL_OK")
</pallas_src>

<mosaic_0001>
module attributes {stable_mosaic.version = 11 : i64} {
  func.func @_fused_kernel(%arg0: i32, %arg1: memref<512x36xf32, #tpu.memory_space<vmem>>, %arg2: memref<36x32xf32, #tpu.memory_space<vmem>>, %arg3: memref<1x32xf32, #tpu.memory_space<vmem>>, %arg4: memref<8x128xf32, #tpu.memory_space<vmem>>, %arg5: memref<32x512xbf16, #tpu.memory_space<vmem>>, %arg6: memref<1x512xf32, #tpu.memory_space<vmem>>, %arg7: memref<512x512xbf16, #tpu.memory_space<vmem>>, %arg8: memref<1x512xf32, #tpu.memory_space<vmem>>, %arg9: memref<512x128xbf16, #tpu.memory_space<vmem>>, %arg10: memref<1x128xf32, #tpu.memory_space<vmem>>, %arg11: memref<8x128xf32, #tpu.memory_space<vmem>>) attributes {dimension_semantics = [#tpu.dimension_semantics<arbitrary>], iteration_bounds = array<i64: 1>, scalar_prefetch = 0 : i64, scratch_operands = 0 : i64, tpu.core_type = #tpu.core_type<tc>, window_params = [{pipeline_mode = #tpu.pipeline_mode<synchronous>, transform_indices = @transform_0, window_bounds = array<i64: 512, 36>}, {pipeline_mode = #tpu.pipeline_mode<synchronous>, transform_indices = @transform_1, window_bounds = array<i64: 36, 32>}, {pipeline_mode = #tpu.pipeline_mode<synchronous>, transform_indices = @transform_2, window_bounds = array<i64: 1, 32>}, {pipeline_mode = #tpu.pipeline_mode<synchronous>, transform_indices = @transform_3, window_bounds = array<i64: 8, 128>}, {pipeline_mode = #tpu.pipeline_mode<synchronous>, transform_indices = @transform_4, window_bounds = array<i64: 32, 512>}, {pipeline_mode = #tpu.pipeline_mode<synchronous>, transform_indices = @transform_5, window_bounds = array<i64: 1, 512>}, {pipeline_mode = #tpu.pipeline_mode<synchronous>, transform_indices = @transform_6, window_bounds = array<i64: 512, 512>}, {pipeline_mode = #tpu.pipeline_mode<synchronous>, transform_indices = @transform_7, window_bounds = array<i64: 1, 512>}, {pipeline_mode = #tpu.pipeline_mode<synchronous>, transform_indices = @transform_8, window_bounds = array<i64: 512, 128>}, {pipeline_mode = #tpu.pipeline_mode<synchronous>, transform_indices = @transform_9, window_bounds = array<i64: 1, 128>}, {pipeline_mode = #tpu.pipeline_mode<synchronous>, transform_indices = @transform_10, window_bounds = array<i64: 8, 128>}]} {
    %c0 = arith.constant 0 : index
    %c0_0 = arith.constant 0 : index
    %0 = vector.load %arg1[%c0, %c0_0] : memref<512x36xf32, #tpu.memory_space<vmem>>, vector<512x36xf32>
    %c0_1 = arith.constant 0 : index
    %c0_2 = arith.constant 0 : index
    %1 = vector.load %arg2[%c0_1, %c0_2] : memref<36x32xf32, #tpu.memory_space<vmem>>, vector<36x32xf32>
    %cst = arith.constant dense<0.000000e+00> : vector<512x32xf32>
    %2 = tpu.matmul %0, %1, %cst {dimension_numbers = #tpu.dot_dimension_numbers<[1], [0], [0], [1], [0, 0, 1, 1], [], []>} : vector<512x36xf32>, vector<36x32xf32>, vector<512x32xf32> -> vector<512x32xf32>
    %c0_3 = arith.constant 0 : index
    %c0_4 = arith.constant 0 : index
    %3 = vector.load %arg3[%c0_3, %c0_4] : memref<1x32xf32, #tpu.memory_space<vmem>>, vector<1x32xf32>
    %4 = vector.broadcast %3 : vector<1x32xf32> to vector<512x32xf32>
    %5 = arith.addf %2, %4 : vector<512x32xf32>
    %cst_5 = arith.constant 0.000000e+00 : f32
    %6 = vector.broadcast %cst_5 : f32 to vector<512x32xf32>
    %7 = arith.maximumf %5, %6 : vector<512x32xf32>
    %8 = vector.extract_strided_slice %7 {offsets = [0, 0], sizes = [128, 32], strides = [1, 1]} : vector<512x32xf32> to vector<128x32xf32>
    %9 = vector.extract_strided_slice %7 {offsets = [128, 0], sizes = [128, 32], strides = [1, 1]} : vector<512x32xf32> to vector<128x32xf32>
    %10 = arith.maximumf %8, %9 : vector<128x32xf32>
    %11 = vector.extract_strided_slice %7 {offsets = [256, 0], sizes = [128, 32], strides = [1, 1]} : vector<512x32xf32> to vector<128x32xf32>
    %12 = vector.extract_strided_slice %7 {offsets = [384, 0], sizes = [128, 32], strides = [1, 1]} : vector<512x32xf32> to vector<128x32xf32>
    %13 = arith.maximumf %11, %12 : vector<128x32xf32>
    %14 = arith.maximumf %10, %13 : vector<128x32xf32>
    %c0_6 = arith.constant 0 : index
    %c0_7 = arith.constant 0 : index
    %15 = vector.load %arg4[%c0_6, %c0_7] : memref<8x128xf32, #tpu.memory_space<vmem>>, vector<8x128xf32>
    %cst_8 = arith.constant dense<0.000000e+00> : vector<8x32xf32>
    %16 = tpu.matmul %15, %14, %cst_8 {dimension_numbers = #tpu.dot_dimension_numbers<[1], [0], [0], [1], [0, 0, 1, 1], [], []>} : vector<8x128xf32>, vector<128x32xf32>, vector<8x32xf32> -> vector<8x32xf32>
    %17 = arith.truncf %16 : vector<8x32xf32> to vector<8x32xbf16>
    %c0_9 = arith.constant 0 : index
    %c0_10 = arith.constant 0 : index
    %18 = vector.load %arg5[%c0_9, %c0_10] : memref<32x512xbf16, #tpu.memory_space<vmem>>, vector<32x512xbf16>
    %cst_11 = arith.constant dense<0.000000e+00> : vector<8x512xf32>
    %19 = tpu.matmul %17, %18, %cst_11 {dimension_numbers = #tpu.dot_dimension_numbers<[1], [0], [0], [1], [0, 0, 1, 1], [], []>} : vector<8x32xbf16>, vector<32x512xbf16>, vector<8x512xf32> -> vector<8x512xf32>
    %c0_12 = arith.constant 0 : index
    %c0_13 = arith.constant 0 : index
    %20 = vector.load %arg6[%c0_12, %c0_13] : memref<1x512xf32, #tpu.memory_space<vmem>>, vector<1x512xf32>
    %21 = vector.broadcast %20 : vector<1x512xf32> to vector<8x512xf32>
    %22 = arith.addf %19, %21 : vector<8x512xf32>
    %cst_14 = arith.constant 0.000000e+00 : f32
    %23 = vector.broadcast %cst_14 : f32 to vector<8x512xf32>
    %24 = arith.maximumf %22, %23 : vector<8x512xf32>
    %25 = arith.truncf %24 : vector<8x512xf32> to vector<8x512xbf16>
    %c0_15 = arith.constant 0 : index
    %c0_16 = arith.constant 0 : index
    %26 = vector.load %arg7[%c0_15, %c0_16] : memref<512x512xbf16, #tpu.memory_space<vmem>>, vector<512x512xbf16>
    %cst_17 = arith.constant dense<0.000000e+00> : vector<8x512xf32>
    %27 = tpu.matmul %25, %26, %cst_17 {dimension_numbers = #tpu.dot_dimension_numbers<[1], [0], [0], [1], [0, 0, 1, 1], [], []>} : vector<8x512xbf16>, vector<512x512xbf16>, vector<8x512xf32> -> vector<8x512xf32>
    %c0_18 = arith.constant 0 : index
    %c0_19 = arith.constant 0 : index
    %28 = vector.load %arg8[%c0_18, %c0_19] : memref<1x512xf32, #tpu.memory_space<vmem>>, vector<1x512xf32>
    %29 = vector.broadcast %28 : vector<1x512xf32> to vector<8x512xf32>
    %30 = arith.addf %27, %29 : vector<8x512xf32>
    %cst_20 = arith.constant 0.000000e+00 : f32
    %31 = vector.broadcast %cst_20 : f32 to vector<8x512xf32>
    %32 = arith.maximumf %30, %31 : vector<8x512xf32>
    %33 = arith.truncf %32 : vector<8x512xf32> to vector<8x512xbf16>
    %c0_21 = arith.constant 0 : index
    %c0_22 = arith.constant 0 : index
    %34 = vector.load %arg9[%c0_21, %c0_22] : memref<512x128xbf16, #tpu.memory_space<vmem>>, vector<512x128xbf16>
    %cst_23 = arith.constant dense<0.000000e+00> : vector<8x128xf32>
    %35 = tpu.matmul %33, %34, %cst_23 {dimension_numbers = #tpu.dot_dimension_numbers<[1], [0], [0], [1], [0, 0, 1, 1], [], []>} : vector<8x512xbf16>, vector<512x128xbf16>, vector<8x128xf32> -> vector<8x128xf32>
    %c0_24 = arith.constant 0 : index
    %c0_25 = arith.constant 0 : index
    %36 = vector.load %arg10[%c0_24, %c0_25] : memref<1x128xf32, #tpu.memory_space<vmem>>, vector<1x128xf32>
    %37 = vector.broadcast %36 : vector<1x128xf32> to vector<8x128xf32>
    %38 = arith.addf %35, %37 : vector<8x128xf32>
    %c0_26 = arith.constant 0 : index
    %c0_27 = arith.constant 0 : index
    %39 = vector.load %arg11[%c0_26, %c0_27] : memref<8x128xf32, #tpu.memory_space<vmem>>, vector<8x128xf32>
    tpu.vector_store %arg11[%c0_26, %c0_27], %38 {strides = array<i32>} : memref<8x128xf32, #tpu.memory_space<vmem>>, vector<8x128xf32>,
    return
  }
  func.func @transform_0(%arg0: i32) -> (i32, i32) {
    %c0_i32 = arith.constant 0 : i32
    %c0_i32_0 = arith.constant 0 : i32
    %c0_i32_1 = arith.constant 0 : i32
    return %c0_i32, %c0_i32_0 : i32, i32
  }
  func.func @transform_1(%arg0: i32) -> (i32, i32) {
    %c0_i32 = arith.constant 0 : i32
    %c0_i32_0 = arith.constant 0 : i32
    %c0_i32_1 = arith.constant 0 : i32
    return %c0_i32, %c0_i32_0 : i32, i32
  }
  func.func @transform_2(%arg0: i32) -> (i32, i32) {
    %c0_i32 = arith.constant 0 : i32
    %c0_i32_0 = arith.constant 0 : i32
    %c0_i32_1 = arith.constant 0 : i32
    return %c0_i32, %c0_i32_0 : i32, i32
  }
  func.func @transform_3(%arg0: i32) -> (i32, i32) {
    %c0_i32 = arith.constant 0 : i32
    %c0_i32_0 = arith.constant 0 : i32
    %c0_i32_1 = arith.constant 0 : i32
    return %c0_i32, %c0_i32_0 : i32, i32
  }
  func.func @transform_4(%arg0: i32) -> (i32, i32) {
    %c0_i32 = arith.constant 0 : i32
    %c0_i32_0 = arith.constant 0 : i32
    %c0_i32_1 = arith.constant 0 : i32
    return %c0_i32, %c0_i32_0 : i32, i32
  }
  func.func @transform_5(%arg0: i32) -> (i32, i32) {
    %c0_i32 = arith.constant 0 : i32
    %c0_i32_0 = arith.constant 0 : i32
    %c0_i32_1 = arith.constant 0 : i32
    return %c0_i32, %c0_i32_0 : i32, i32
  }
  func.func @transform_6(%arg0: i32) -> (i32, i32) {
    %c0_i32 = arith.constant 0 : i32
    %c0_i32_0 = arith.constant 0 : i32
    %c0_i32_1 = arith.constant 0 : i32
    return %c0_i32, %c0_i32_0 : i32, i32
  }
  func.func @transform_7(%arg0: i32) -> (i32, i32) {
    %c0_i32 = arith.constant 0 : i32
    %c0_i32_0 = arith.constant 0 : i32
    %c0_i32_1 = arith.constant 0 : i32
    return %c0_i32, %c0_i32_0 : i32, i32
  }
  func.func @transform_8(%arg0: i32) -> (i32, i32) {
    %c0_i32 = arith.constant 0 : i32
    %c0_i32_0 = arith.constant 0 : i32
    %c0_i32_1 = arith.constant 0 : i32
    return %c0_i32, %c0_i32_0 : i32, i32
  }
  func.func @transform_9(%arg0: i32) -> (i32, i32) {
    %c0_i32 = arith.constant 0 : i32
    %c0_i32_0 = arith.constant 0 : i32
    %c0_i32_1 = arith.constant 0 : i32
    return %c0_i32, %c0_i32_0 : i32, i32
  }
  func.func @transform_10(%arg0: i32) -> (i32, i32) {
    %c0_i32 = arith.constant 0 : i32
    %c0_i32_0 = arith.constant 0 : i32
    %c0_i32_1 = arith.constant 0 : i32
    return %c0_i32, %c0_i32_0 : i32, i32
  }
}

</mosaic_0001>

<bundles_post_ra>
// kernel: self_car_driving_forward.1
= control target key start
LH: loop header
LB: loop body
LE: loop exit
PB: predicated region body
PF: predicated region fallthrough
CT: control target
= control target key end

     0   :  { %vm112_vm0 = vcmask 293888   ;;  %vm305_vm1 = vcmask 1043456   ;;  %vm3145_vm2 = vmmov 0   ;;  %vm948_vm3 = vcmask 261120   ;;  %s4187_s1 = inlined_call_operand.vmem [shape: f32[36,32], index: 1, kind: input, shape index: {}]   ;;  %s4188_s0 = inlined_call_operand.vmem [shape: f32[512,36], index: 0, kind: input, shape index: {}]   ;;  %s4189_s4 = inlined_call_operand.vmem [shape: bf16[32,512], index: 4, kind: input, shape index: {}]   ;;  %s4190_s2 = inlined_call_operand.vmem [shape: f32[1,32], index: 2, kind: input, shape index: {}]   ;;  %s4191_s3 = inlined_call_operand.vmem [shape: f32[8,128], index: 3, kind: input, shape index: {}]   ;;  %s4192_s6 = inlined_call_operand.vmem [shape: bf16[512,512], index: 6, kind: input, shape index: {}]   ;;  %s4193_s8 = inlined_call_operand.vmem [shape: bf16[512,128], index: 8, kind: input, shape index: {}]   ;;  %s4194_s5 = inlined_call_operand.vmem [shape: f32[1,512], index: 5, kind: input, shape index: {}]   ;;  %s4195_s7 = inlined_call_operand.vmem [shape: f32[1,512], index: 7, kind: input, shape index: {}]   ;;  %s4196_s9 = inlined_call_operand.vmem [shape: f32[1,128], index: 9, kind: input, shape index: {}]   ;;  %s4197_s10 = inlined_call_operand.vmem [shape: f32[8,128], index: 10, kind: output, shape index: {}]  }
   0x1   :  { %v100_v0 = vld [vmem:[%s4187_s1] sm:$0xff]  ;;  %v101_v1 = vld [vmem:[%s4187_s1 + $0x8] sm:$0xff]  ;;  %v102_v2 = vld [vmem:[%s4187_s1 + $0x10] sm:$0xff] }
   0x2   :  { %v2860_v3 = vpack.c.bf16 %v101_v1, %v100_v0  ;;  %v103_v4 = vld [vmem:[%s4187_s1 + $0x18] sm:$0xff]  ;;  %v36_v5 = vld [vmem:[%s4188_s0] sm:$0xff]  ;;  %v37_v8 = vld [vmem:[%s4188_s0 + $0x8] sm:$0xff] }
   0x3   :  { %v2864_v6 = vpack.c.bf16 %v103_v4, %v102_v2  ;;  %2729 = vmatprep.mubr.msk.f32.mxu0 %vm112_vm0, %v36_v5  ;;  %v104_v7 = vld [vmem:[%s4187_s1 + $0x20] sm:$0xf]  ;;  %v38_v9 = vld [vmem:[%s4188_s0 + $0x10] sm:$0xff]  ;;  %v39_v10 = vld [vmem:[%s4188_s0 + $0x18] sm:$0xff] }
   0x4   :  { %2861 = vmatprep.subr.bf16.mxu0 %v2860_v3  ;;  %v40_v11 = vld [vmem:[%s4188_s0 + $0x20] sm:$0xff]  ;;  %v41_v12 = vld [vmem:[%s4188_s0 + $0x28] sm:$0xff]  ;;  %v42_v13 = vld [vmem:[%s4188_s0 + $0x30] sm:$0xff] }
   0x5   :  { %2863 = vmatpush3.bf16.msra.mxu0 %v2860_v3  ;;  %v43_v14 = vld [vmem:[%s4188_s0 + $0x38] sm:$0xff]  ;;  %v44_v15 = vld [vmem:[%s4188_s0 + $0x40] sm:$0xff]  ;;  %v45_v16 = vld [vmem:[%s4188_s0 + $0x48] sm:$0xff] }
   0x6   :  { %2865 = vmatprep.subr.bf16.mxu0 %v2864_v6  ;;  %v46_v17 = vld [vmem:[%s4188_s0 + $0x50] sm:$0xff]  ;;  %v47_v18 = vld [vmem:[%s4188_s0 + $0x58] sm:$0xff]  ;;  %v48_v19 = vld [vmem:[%s4188_s0 + $0x60] sm:$0xff] }
   0x7   :  { %v49_v20 = vld [vmem:[%s4188_s0 + $0x68] sm:$0xff]  ;;  %v50_v21 = vld [vmem:[%s4188_s0 + $0x70] sm:$0xff]  ;;  %v51_v22 = vld [vmem:[%s4188_s0 + $0x78] sm:$0xff] }
   0x8   :  { %v52_v23 = vld [vmem:[%s4188_s0 + $0x80] sm:$0xff]  ;;  %v53_v24 = vld [vmem:[%s4188_s0 + $0x88] sm:$0xff]  ;;  %v54_v25 = vld [vmem:[%s4188_s0 + $0x90] sm:$0xff] }
   0x9   :  { %2867 = vmatpush3.bf16.msra.mxu0 %v2864_v6  ;;  %v55_v26 = vld [vmem:[%s4188_s0 + $0x98] sm:$0xff]  ;;  %v56_v27 = vld [vmem:[%s4188_s0 + $0xa0] sm:$0xff]  ;;  %v57_v28 = vld [vmem:[%s4188_s0 + $0xa8] sm:$0xff] }
   0xa   :  { %2727 = vmatprep.subr.msk.mxu0 %vm305_vm1, %v104_v7  ;;  %v58_v29 = vld [vmem:[%s4188_s0 + $0xb0] sm:$0xff]  ;;  %v59_v30 = vld [vmem:[%s4188_s0 + $0xb8] sm:$0xff]  ;;  %v60_v31 = vld [vmem:[%s4188_s0 + $0xc0] sm:$0xff] }
   0xb   :  { %v61_v32 = vld [vmem:[%s4188_s0 + $0xc8] sm:$0xff]  ;;  %v62_v33 = vld [vmem:[%s4188_s0 + $0xd0] sm:$0xff]  ;;  %v63_v34 = vld [vmem:[%s4188_s0 + $0xd8] sm:$0xff] }
   0xc   :  { %v64_v35 = vld [vmem:[%s4188_s0 + $0xe0] sm:$0xff]  ;;  %v65_v36 = vld [vmem:[%s4188_s0 + $0xe8] sm:$0xff]  ;;  %v66_v37 = vld [vmem:[%s4188_s0 + $0xf0] sm:$0xff] }
   0xd   :  { %2728 = vmatpush3.msk.msra.mxu0 %vm305_vm1, %v104_v7  ;;  %v67_v38 = vld [vmem:[%s4188_s0 + $0xf8] sm:$0xff]  ;;  %v68_v39 = vld [vmem:[%s4188_s0 + $0x100] sm:$0xff]  ;;  %v69_v40 = vld [vmem:[%s4188_s0 + $0x108] sm:$0xff]  ;;  %v3144_v7 = vmov 0.0|0.0  }
   0xe   :  { %2730 = vmatmul.mubr.msk.f32.vlgmr.msra.gmra.mrb[0].mxu0 %vm112_vm0, %v37_v8  ;;  %v70_v41 = vld [vmem:[%s4188_s0 + $0x110] sm:$0xff]  ;;  %v71_v42 = vld [vmem:[%s4188_s0 + $0x118] sm:$0xff]  ;;  %v72_v43 = vld [vmem:[%s4188_s0 + $0x120] sm:$0xff]  ;;  %2868 = vmatprep.subr.bf16.mxu1 %v3144_v7 }
   0xf   :  { %2732 = vmatprep.mubr.msk.f32.mxu0 %vm112_vm0, %v38_v9  ;;  %v73_v44 = vld [vmem:[%s4188_s0 + $0x128] sm:$0xff]  ;;  %v74_v45 = vld [vmem:[%s4188_s0 + $0x130] sm:$0xff]  ;;  %v75_v46 = vld [vmem:[%s4188_s0 + $0x138] sm:$0xff] }
  0x10   :  { %v76_v47 = vld [vmem:[%s4188_s0 + $0x140] sm:$0xff]  ;;  %v77_v48 = vld [vmem:[%s4188_s0 + $0x148] sm:$0xff]  ;;  %v78_v49 = vld [vmem:[%s4188_s0 + $0x150] sm:$0xff] }
  0x11   :  { %v79_v50 = vld [vmem:[%s4188_s0 + $0x158] sm:$0xff]  ;;  %v80_v51 = vld [vmem:[%s4188_s0 + $0x160] sm:$0xff]  ;;  %v81_v52 = vld [vmem:[%s4188_s0 + $0x168] sm:$0xff] }
  0x12   :  { %2733 = vmatmul.mubr.msk.f32.gmra.mrb[2].mxu0 %vm112_vm0, %v39_v10  ;;  %v82_v53 = vld [vmem:[%s4188_s0 + $0x170] sm:$0xff]  ;;  %v83_v54 = vld [vmem:[%s4188_s0 + $0x178] sm:$0xff]  ;;  %v84_v55 = vld [vmem:[%s4188_s0 + $0x180] sm:$0xff] }
  0x13   :  { %2735 = vmatprep.mubr.msk.f32.mxu0 %vm112_vm0, %v40_v11  ;;  %v85_v56 = vld [vmem:[%s4188_s0 + $0x188] sm:$0xff]  ;;  %v86_v57 = vld [vmem:[%s4188_s0 + $0x190] sm:$0xff]  ;;  %v87_v58 = vld [vmem:[%s4188_s0 + $0x198] sm:$0xff] }
  0x14   :  { %v88_v59 = vld [vmem:[%s4188_s0 + $0x1a0] sm:$0xff]  ;;  %v89_v60 = vld [vmem:[%s4188_s0 + $0x1a8] sm:$0xff]  ;;  %v90_v61 = vld [vmem:[%s4188_s0 + $0x1b0] sm:$0xff] }
  0x15   :  { %v91_v62 = vld [vmem:[%s4188_s0 + $0x1b8] sm:$0xff]  ;;  %v92_v63 = vld [vmem:[%s4188_s0 + $0x1c0] sm:$0xff]  ;;  %v93_v0 = vld [vmem:[%s4188_s0 + $0x1c8] sm:$0xff] }
  0x16   :  { %2736 = vmatmul.mubr.msk.f32.gmra.mrb[4].mxu0 %vm112_vm0, %v41_v12  ;;  %v94_v1 = vld [vmem:[%s4188_s0 + $0x1d0] sm:$0xff]  ;;  %v95_v2 = vld [vmem:[%s4188_s0 + $0x1d8] sm:$0xff]  ;;  %v96_v3 = vld [vmem:[%s4188_s0 + $0x1e0] sm:$0xff] }
  0x17   :  { %2738 = vmatprep.mubr.msk.f32.mxu0 %vm112_vm0, %v42_v13  ;;  %v97_v4 = vld [vmem:[%s4188_s0 + $0x1e8] sm:$0xff]  ;;  %v98_v5 = vld [vmem:[%s4188_s0 + $0x1f0] sm:$0xff]  ;;  %v99_v6 = vld [vmem:[%s4188_s0 + $0x1f8] sm:$0xff] }
  0x1a   :  { %2739 = vmatmul.mubr.msk.f32.gmra.mrb[6].mxu0 %vm112_vm0, %v43_v14  ;;  %v3146_v14 = vmov 0.0  }
  0x1b   :  { %2741 = vmatprep.mubr.msk.f32.mxu0 %vm112_vm0, %v44_v15  ;;  %2857 = vmatprep.mubr.msk.f32.mxu1 %vm3145_vm2, %v3146_v14 }
  0x1e   :  { %2742 = vmatmul.mubr.msk.f32.gmra.mrb[8].mxu0 %vm112_vm0, %v45_v16 }
  0x1f   :  { %2744 = vmatprep.mubr.msk.f32.mxu0 %vm112_vm0, %v46_v17 }
  0x22   :  { %2745 = vmatmul.mubr.msk.f32.gmra.mrb[10].mxu0 %vm112_vm0, %v47_v18 }
  0x23   :  { %2747 = vmatprep.mubr.msk.f32.mxu0 %vm112_vm0, %v48_v19 }
  0x26   :  { %2748 = vmatmul.mubr.msk.f32.gmra.mrb[12].mxu0 %vm112_vm0, %v49_v20 }
  0x27   :  { %2750 = vmatprep.mubr.msk.f32.mxu0 %vm112_vm0, %v50_v21 }
  0x2a   :  { %2751 = vmatmul.mubr.msk.f32.gmra.mrb[14].mxu0 %vm112_vm0, %v51_v22 }
  0x2b   :  { %2753 = vmatprep.mubr.msk.f32.mxu0 %vm112_vm0, %v52_v23  ;;  %v3486_v23 = vld [vmem:[%s4190_s2] ss:$0 sm:$0xff] }
  0x2e   :  { %2754 = vmatmul.mubr.msk.f32.gmra.mrb[16].mxu0 %vm112_vm0, %v53_v24 }
  0x2f   :  { %2756 = vmatprep.mubr.msk.f32.mxu0 %vm112_vm0, %v54_v25 }
  0x32   :  { %2757 = vmatmul.mubr.msk.f32.gmra.mrb[18].mxu0 %vm112_vm0, %v55_v26 }
  0x33   :  { %2759 = vmatprep.mubr.msk.f32.mxu0 %vm112_vm0, %v56_v27 }
  0x36   :  { %2760 = vmatmul.mubr.msk.f32.gmra.mrb[20].mxu0 %vm112_vm0, %v57_v28 }
  0x37   :  { %2762 = vmatprep.mubr.msk.f32.mxu0 %vm112_vm0, %v58_v29 }
  0x3a   :  { %2763 = vmatmul.mubr.msk.f32.gmra.mrb[22].mxu0 %vm112_vm0, %v59_v30 }
  0x3b   :  { %2765 = vmatprep.mubr.msk.f32.mxu0 %vm112_vm0, %v60_v31 }
  0x3e   :  { %2766 = vmatmul.mubr.msk.f32.gmra.mrb[24].mxu0 %vm112_vm0, %v61_v32 }
  0x3f   :  { %2768 = vmatprep.mubr.msk.f32.mxu0 %vm112_vm0, %v62_v33 }
  0x42   :  { %2769 = vmatmul.mubr.msk.f32.gmra.mrb[26].mxu0 %vm112_vm0, %v63_v34 }
  0x43   :  { %2771 = vmatprep.mubr.msk.f32.mxu0 %vm112_vm0, %v64_v35 }
  0x46   :  { %2772 = vmatmul.mubr.msk.f32.gmra.mrb[28].mxu0 %vm112_vm0, %v65_v36 }
  0x47   :  { %2774 = vmatprep.mubr.msk.f32.mxu0 %vm112_vm0, %v66_v37 }
  0x4a   :  { %2775 = vmatmul.mubr.msk.f32.gmra.mrb[30].mxu0 %vm112_vm0, %v67_v38 }
  0x4b   :  { %2777 = vmatprep.mubr.msk.f32.mxu0 %vm112_vm0, %v68_v39 }
  0x4e   :  { %2778 = vmatmul.mubr.msk.f32.gmra.mrb[32].mxu0 %vm112_vm0, %v69_v40 }
  0x4f   :  { %2780 = vmatprep.mubr.msk.f32.mxu0 %vm112_vm0, %v70_v41 }
  0x52   :  { %2781 = vmatmul.mubr.msk.f32.gmra.mrb[34].mxu0 %vm112_vm0, %v71_v42 }
  0x53   :  { %2783 = vmatprep.mubr.msk.f32.mxu0 %vm112_vm0, %v72_v43 }
  0x56   :  { %2784 = vmatmul.mubr.msk.f32.gmra.mrb[36].mxu0 %vm112_vm0, %v73_v44 }
  0x57   :  { %2786 = vmatprep.mubr.msk.f32.mxu0 %vm112_vm0, %v74_v45 }
  0x5a   :  { %2787 = vmatmul.mubr.msk.f32.gmra.mrb[38].mxu0 %vm112_vm0, %v75_v46 }
  0x5b   :  { %2789 = vmatprep.mubr.msk.f32.mxu0 %vm112_vm0, %v76_v47 }
  0x5e   :  { %2790 = vmatmul.mubr.msk.f32.gmra.mrb[40].mxu0 %vm112_vm0, %v77_v48 }
  0x5f   :  { %2792 = vmatprep.mubr.msk.f32.mxu0 %vm112_vm0, %v78_v49 }
  0x62   :  { %2793 = vmatmul.mubr.msk.f32.gmra.mrb[42].mxu0 %vm112_vm0, %v79_v50 }
  0x63   :  { %2795 = vmatprep.mubr.msk.f32.mxu0 %vm112_vm0, %v80_v51 }
  0x66   :  { %2796 = vmatmul.mubr.msk.f32.gmra.mrb[44].mxu0 %vm112_vm0, %v81_v52 }
  0x67   :  { %2798 = vmatprep.mubr.msk.f32.mxu0 %vm112_vm0, %v82_v53 }
  0x6a   :  { %2799 = vmatmul.mubr.msk.f32.gmra.mrb[46].mxu0 %vm112_vm0, %v83_v54 }
  0x6b   :  { %2801 = vmatprep.mubr.msk.f32.mxu0 %vm112_vm0, %v84_v55 }
  0x6e   :  { %2802 = vmatmul.mubr.msk.f32.gmra.mrb[48].mxu0 %vm112_vm0, %v85_v56 }
  0x6f   :  { %2804 = vmatprep.mubr.msk.f32.mxu0 %vm112_vm0, %v86_v57 }
  0x72   :  { %2805 = vmatmul.mubr.msk.f32.gmra.mrb[50].mxu0 %vm112_vm0, %v87_v58 }
  0x73   :  { %2807 = vmatprep.mubr.msk.f32.mxu0 %vm112_vm0, %v88_v59 }
  0x76   :  { %2808 = vmatmul.mubr.msk.f32.gmra.mrb[52].mxu0 %vm112_vm0, %v89_v60 }
  0x77   :  { %2810 = vmatprep.mubr.msk.f32.mxu0 %vm112_vm0, %v90_v61 }
  0x7a   :  { %2811 = vmatmul.mubr.msk.f32.gmra.mrb[54].mxu0 %vm112_vm0, %v91_v62 }
  0x7b   :  { %2813 = vmatprep.mubr.msk.f32.mxu0 %vm112_vm0, %v92_v63 }
  0x7e   :  { %2814 = vmatmul.mubr.msk.f32.gmra.mrb[56].mxu0 %vm112_vm0, %v93_v0 }
  0x7f   :  { %2816 = vmatprep.mubr.msk.f32.mxu0 %vm112_vm0, %v94_v1 }
  0x82   :  { %2817 = vmatmul.mubr.msk.f32.gmra.mrb[58].mxu0 %vm112_vm0, %v95_v2 }
  0x83   :  { %2819 = vmatprep.mubr.msk.f32.mxu0 %vm112_vm0, %v96_v3 }
  0x86   :  { %2820 = vmatmul.mubr.msk.f32.gmra.mrb[60].mxu0 %vm112_vm0, %v97_v4 }
  0x87   :  { %2822 = vmatprep.mubr.msk.f32.mxu0 %vm112_vm0, %v98_v5 }
  0x8a   :  { %2823 = vmatmul.mubr.msk.f32.gmra.mrb[62].mxu0 %vm112_vm0, %v99_v6 }
  0xe1   :  { %v2731_v8 = vpop.f32.mrb[0].mxu0 }
  0xe2   :  { %v375_v9 = vpop.f32.mrb[1].mxu0  ;;  %v381_v26 = vadd.f32 %v2731_v8, %v3486_v23 }
  0xe3   :  { %v376_v27 = vadd.f32 %v3486_v23, %v375_v9 }
  0xe4   :  { %v695_v32 = vmax.f32 %v381_v26, 0.0 }
  0xe5   :  { %v2734_v10 = vpop.f32.mrb[2].mxu0  ;;  %v694_v35 = vmax.f32 %v376_v27, 0.0 }
  0xe6   :  { %v385_v11 = vpop.f32.mrb[3].mxu0  ;;  %v391_v33 = vadd.f32 %v2734_v10, %v3486_v23 }
  0xe7   :  { %v386_v36 = vadd.f32 %v3486_v23, %v385_v11 }
  0xe8   :  { %v697_v44 = vmax.f32 %v391_v33, 0.0 }
  0xe9   :  { %v2737_v12 = vpop.f32.mrb[4].mxu0  ;;  %v696_v47 = vmax.f32 %v386_v36, 0.0 }
  0xea   :  { %v395_v13 = vpop.f32.mrb[5].mxu0  ;;  %v401_v45 = vadd.f32 %v2737_v12, %v3486_v23 }
  0xeb   :  { %v396_v48 = vadd.f32 %v3486_v23, %v395_v13 }
  0xec   :  { %v699_v56 = vmax.f32 %v401_v45, 0.0 }
  0xed   :  { %v2740_v15 = vpop.f32.mrb[6].mxu0  ;;  %v698_v59 = vmax.f32 %v396_v48, 0.0 }
  0xee   :  { %v405_v16 = vpop.f32.mrb[7].mxu0  ;;  %v411_v57 = vadd.f32 %v2740_v15, %v3486_v23 }
  0xef   :  { %v406_v60 = vadd.f32 %v3486_v23, %v405_v16 }
  0xf0   :  { %v701_v4 = vmax.f32 %v411_v57, 0.0 }
  0xf1   :  { %v2743_v17 = vpop.f32.mrb[8].mxu0  ;;  %v700_v8 = vmax.f32 %v406_v60, 0.0 }
  0xf2   :  { %v415_v18 = vpop.f32.mrb[9].mxu0  ;;  %v421_v5 = vadd.f32 %v2743_v17, %v3486_v23 }
  0xf3   :  { %v416_v9 = vadd.f32 %v3486_v23, %v415_v18 }
  0xf4   :  { %v703_v26 = vmax.f32 %v421_v5, 0.0 }
  0xf5   :  { %v3475_v19 = vpop.f32.mrb[10].mxu0 }
  0xf6   :  { %v3477_v20 = vpop.f32.mrb[11].mxu0  ;;  %v431_v27 = vadd.f32 %v3475_v19, %v3486_v23 }
  0xf7   :  { %v426_v18 = vadd.f32 %v3486_v23, %v3477_v20 }
  0xf8   :  { %v705_v36 = vmax.f32 %v431_v27, 0.0 }
  0xf9   :  { %v3479_v21 = vpop.f32.mrb[12].mxu0 }
  0xfa   :  { %v3481_v22 = vpop.f32.mrb[13].mxu0  ;;  %v441_v19 = vadd.f32 %v3479_v21, %v3486_v23 }
  0xfb   :  { %v436_v20 = vadd.f32 %v3486_v23, %v3481_v22 }
  0xfc   :  { %v707_v48 = vmax.f32 %v441_v19, 0.0 }
  0xfd   :  { %v3488_v24 = vpop.f32.mrb[14].mxu0 }
  0xfe   :  { %v3490_v25 = vpop.f32.mrb[15].mxu0  ;;  %v451_v21 = vadd.f32 %v3488_v24, %v3486_v23 }
  0xff   :  { %v446_v22 = vadd.f32 %v3486_v23, %v3490_v25 }
 0x100   :  { %v709_v60 = vmax.f32 %v451_v21, 0.0 }
 0x101   :  { %v2755_v28 = vpop.f32.mrb[16].mxu0 }
 0x102   :  { %v461_v29 = vadd.f32 %v2755_v28, %v3486_v23  ;;  %v455_v30 = vpop.f32.mrb[17].mxu0  ;;  %v702_v28 = vmax.f32 %v416_v9, 0.0 }
 0x103   :  { %v456_v31 = vadd.f32 %v3486_v23, %v455_v30 }
 0x104   :  { %v711_v34 = vmax.f32 %v461_v29, 0.0 }
 0x105   :  { %v710_v37 = vmax.f32 %v456_v31, 0.0  ;;  %v2758_v38 = vpop.f32.mrb[18].mxu0 }
 0x106   :  { %v3498_v39 = vmax.f32 %v695_v32, %v711_v34  ;;  %v471_v40 = vadd.f32 %v2758_v38, %v3486_v23  ;;  %v465_v41 = vpop.f32.mrb[19].mxu0  ;;  %v704_v38 = vmax.f32 %v426_v18, 0.0 }
 0x107   :  { %v3501_v42 = vmax.f32 %v694_v35, %v710_v37  ;;  %v466_v43 = vadd.f32 %v3486_v23, %v465_v41 }
 0x108   :  { %v713_v46 = vmax.f32 %v471_v40, 0.0 }
 0x109   :  { %v712_v49 = vmax.f32 %v466_v43, 0.0  ;;  %v2761_v50 = vpop.f32.mrb[20].mxu0 }
 0x10a   :  { %v3506_v51 = vmax.f32 %v697_v44, %v713_v46  ;;  %v481_v52 = vadd.f32 %v2761_v50, %v3486_v23  ;;  %v475_v53 = vpop.f32.mrb[21].mxu0  ;;  %v706_v50 = vmax.f32 %v436_v20, 0.0 }
 0x10b   :  { %v3509_v54 = vmax.f32 %v696_v47, %v712_v49  ;;  %v476_v55 = vadd.f32 %v3486_v23, %v475_v53 }
 0x10c   :  { %v715_v58 = vmax.f32 %v481_v52, 0.0 }
 0x10d   :  { %v714_v61 = vmax.f32 %v476_v55, 0.0  ;;  %v2764_v62 = vpop.f32.mrb[22].mxu0 }
 0x10e   :  { %v3514_v63 = vmax.f32 %v699_v56, %v715_v58  ;;  %v491_v0 = vadd.f32 %v2764_v62, %v3486_v23  ;;  %v485_v1 = vpop.f32.mrb[23].mxu0  ;;  %v708_v62 = vmax.f32 %v446_v22, 0.0 }
 0x10f   :  { %v3517_v2 = vmax.f32 %v698_v59, %v714_v61  ;;  %v486_v3 = vadd.f32 %v3486_v23, %v485_v1 }
 0x110   :  { %v717_v6 = vmax.f32 %v491_v0, 0.0 }
 0x111   :  { %v716_v10 = vmax.f32 %v486_v3, 0.0  ;;  %v2767_v11 = vpop.f32.mrb[24].mxu0 }
 0x112   :  { %v3522_v12 = vmax.f32 %v701_v4, %v717_v6  ;;  %v501_v13 = vadd.f32 %v2767_v11, %v3486_v23  ;;  %v495_v14 = vpop.f32.mrb[25].mxu0 }
 0x113   :  { %v3525_v15 = vmax.f32 %v700_v8, %v716_v10  ;;  %v496_v16 = vadd.f32 %v3486_v23, %v495_v14 }
 0x114   :  { %v719_v17 = vmax.f32 %v501_v13, 0.0 }
 0x115   :  { %v718_v29 = vmax.f32 %v496_v16, 0.0  ;;  %v2770_v30 = vpop.f32.mrb[26].mxu0 }
 0x116   :  { %v3532_v31 = vmax.f32 %v703_v26, %v719_v17  ;;  %v511_v32 = vadd.f32 %v2770_v30, %v3486_v23  ;;  %v505_v33 = vpop.f32.mrb[27].mxu0 }
 0x117   :  { %v3535_v34 = vmax.f32 %v702_v28, %v718_v29  ;;  %v506_v35 = vadd.f32 %v3486_v23, %v505_v33 }
 0x118   :  { %v721_v37 = vmax.f32 %v511_v32, 0.0 }
 0x119   :  { %v720_v40 = vmax.f32 %v506_v35, 0.0  ;;  %v2773_v41 = vpop.f32.mrb[28].mxu0 }
 0x11a   :  { %v3542_v43 = vmax.f32 %v705_v36, %v721_v37  ;;  %v521_v44 = vadd.f32 %v2773_v41, %v3486_v23  ;;  %v515_v45 = vpop.f32.mrb[29].mxu0 }
 0x11b   :  { %v3545_v46 = vmax.f32 %v704_v38, %v720_v40  ;;  %v516_v47 = vadd.f32 %v3486_v23, %v515_v45 }
 0x11c   :  { %v723_v49 = vmax.f32 %v521_v44, 0.0 }
 0x11d   :  { %v722_v52 = vmax.f32 %v516_v47, 0.0  ;;  %v2776_v53 = vpop.f32.mrb[30].mxu0 }
 0x11e   :  { %v3552_v55 = vmax.f32 %v707_v48, %v723_v49  ;;  %v531_v56 = vadd.f32 %v2776_v53, %v3486_v23  ;;  %v525_v57 = vpop.f32.mrb[31].mxu0 }
 0x11f   :  { %v3555_v58 = vmax.f32 %v706_v50, %v722_v52  ;;  %v526_v59 = vadd.f32 %v3486_v23, %v525_v57 }
 0x120   :  { %v725_v61 = vmax.f32 %v531_v56, 0.0 }
 0x121   :  { %v724_v24 = vmax.f32 %v526_v59, 0.0  ;;  %v2779_v0 = vpop.f32.mrb[32].mxu0 }
 0x122   :  { %v3558_v1 = vmax.f32 %v709_v60, %v725_v61  ;;  %v535_v3 = vpop.f32.mrb[33].mxu0  ;;  %v541_v18 = vadd.f32 %v2779_v0, %v3486_v23 }
 0x123   :  { %v3560_v25 = vmax.f32 %v708_v62, %v724_v24  ;;  %v536_v29 = vadd.f32 %v3486_v23, %v535_v3 }
 0x124   :  { %v727_v36 = vmax.f32 %v541_v18, 0.0 }
 0x125   :  { %v2782_v4 = vpop.f32.mrb[34].mxu0  ;;  %v726_v38 = vmax.f32 %v536_v29, 0.0 }
 0x126   :  { %v545_v5 = vpop.f32.mrb[35].mxu0  ;;  %v551_v19 = vadd.f32 %v2782_v4, %v3486_v23 }
 0x127   :  { %v546_v20 = vadd.f32 %v3486_v23, %v545_v5 }
 0x128   :  { %v729_v49 = vmax.f32 %v551_v19, 0.0 }
 0x129   :  { %v2785_v6 = vpop.f32.mrb[36].mxu0  ;;  %v728_v53 = vmax.f32 %v546_v20, 0.0 }
 0x12a   :  { %v555_v8 = vpop.f32.mrb[37].mxu0  ;;  %v561_v50 = vadd.f32 %v2785_v6, %v3486_v23 }
 0x12b   :  { %v556_v56 = vadd.f32 %v3486_v23, %v555_v8 }
 0x12c   :  { %v731_v5 = vmax.f32 %v561_v50, 0.0 }
 0x12d   :  { %v2788_v9 = vpop.f32.mrb[38].mxu0  ;;  %v730_v29 = vmax.f32 %v556_v56, 0.0 }
 0x12e   :  { %v565_v10 = vpop.f32.mrb[39].mxu0  ;;  %v571_v6 = vadd.f32 %v2788_v9, %v3486_v23 }
 0x12f   :  { %v566_v8 = vadd.f32 %v3486_v23, %v565_v10 }
 0x131   :  { %v2791_v11 = vpop.f32.mrb[40].mxu0 }
 0x132   :  { %v575_v13 = vpop.f32.mrb[41].mxu0 }
 0x135   :  { %v3562_v14 = vpop.f32.mrb[42].mxu0 }
 0x136   :  { %v3564_v16 = vpop.f32.mrb[43].mxu0 }
 0x139   :  { %v3566_v26 = vpop.f32.mrb[44].mxu0 }
 0x13a   :  { %v3568_v27 = vpop.f32.mrb[45].mxu0 }
 0x13d   :  { %v3570_v17 = vpop.f32.mrb[46].mxu0 }
 0x13e   :  { %v3572_v28 = vpop.f32.mrb[47].mxu0 }
 0x141   :  { %v2803_v30 = vpop.f32.mrb[48].mxu0 }
 0x142   :  { %v621_v32 = vadd.f32 %v2803_v30, %v3486_v23  ;;  %v615_v33 = vpop.f32.mrb[49].mxu0 }
 0x143   :  { %v616_v35 = vadd.f32 %v3486_v23, %v615_v33 }
 0x144   :  { %v743_v37 = vmax.f32 %v621_v32, 0.0 }
 0x145   :  { %v742_v40 = vmax.f32 %v616_v35, 0.0  ;;  %v2806_v41 = vpop.f32.mrb[50].mxu0 }
 0x146   :  { %v775_v44 = vmax.f32 %v727_v36, %v743_v37  ;;  %v631_v45 = vadd.f32 %v2806_v41, %v3486_v23  ;;  %v625_v47 = vpop.f32.mrb[51].mxu0 }
 0x147   :  { %v774_v48 = vmax.f32 %v726_v38, %v742_v40  ;;  %v626_v21 = vadd.f32 %v3486_v23, %v625_v47  ;;  %v581_v38 = vadd.f32 %v2791_v11, %v3486_v23  ;;  %v576_v40 = vadd.f32 %v3486_v23, %v575_v13 }
 0x148   :  { %v745_v22 = vmax.f32 %v631_v45, 0.0  ;;  %v791_v52 = vmax.f32 %v3498_v39, %v775_v44 }
 0x149   :  { %v744_v57 = vmax.f32 %v626_v21, 0.0  ;;  %v2809_v59 = vpop.f32.mrb[52].mxu0  ;;  %v790_v60 = vmax.f32 %v3501_v42, %v774_v48 }
 0x14a   :  { %v777_v61 = vmax.f32 %v729_v49, %v745_v22  ;;  %v641_v62 = vadd.f32 %v2809_v59, %v3486_v23  ;;  %v635_v24 = vpop.f32.mrb[53].mxu0  ;;  %v591_v22 = vadd.f32 %v3562_v14, %v3486_v23 }
 0x14b   :  { %v776_v0 = vmax.f32 %v728_v53, %v744_v57  ;;  %v636_v3 = vadd.f32 %v3486_v23, %v635_v24  ;;  %v2869_v4 = vpack.c.bf16 %v791_v52, %v790_v60  ;;  %v734_v52 = vmax.f32 %v576_v40, 0.0 }
 0x14c   :  { %v793_v39 = vmax.f32 %v3506_v51, %v777_v61  ;;  %v747_v18 = vmax.f32 %v641_v62, 0.0  ;;  %v733_v51 = vmax.f32 %v571_v6, 0.0  ;;  %v586_v53 = vadd.f32 %v3486_v23, %v3564_v16 }
 0x14d   :  { %v792_v30 = vmax.f32 %v3509_v54, %v776_v0  ;;  %v746_v42 = vmax.f32 %v636_v3, 0.0  ;;  %v2812_v32 = vpop.f32.mrb[54].mxu0  ;;  %2870 = vmatpush3.bf16.msra.mxu1 %v2869_v4  ;;  %v732_v54 = vmax.f32 %v566_v8, 0.0  ;;  %v737_v0 = vmax.f32 %v591_v22, 0.0  ;;  %v2922_v22 = vld [vmem:[%s4192_s6 + $0xc] ss:$16 sps:$4 sm:$0xff]  }
 0x14e   :  { %v779_v33 = vmax.f32 %v731_v5, %v747_v18  ;;  %v651_v35 = vadd.f32 %v2812_v32, %v3486_v23  ;;  %v645_v36 = vpop.f32.mrb[55].mxu0  ;;  %2871 = vmatprep.subr.bf16.mxu1 %v3144_v7  ;;  %v601_v3 = vadd.f32 %v3566_v26, %v3486_v23  ;;  %v736_v4 = vmax.f32 %v586_v53, 0.0  ;;  %1914 = vmatprep.subr.bf16.mxu0 %v2922_v22  ;;  %v2926_v53 = vld [vmem:[%s4192_s6 + $0x48] ss:$16 sps:$4 sm:$0xff]   ;;  %v3007_v22 = vld [vmem:[%s4192_s6 + $0x1c0] ss:$16 sps:$4 sm:$0xff]  }
 0x14f   :  { %v778_v19 = vmax.f32 %v730_v29, %v746_v42  ;;  %v646_v9 = vadd.f32 %v3486_v23, %v645_v36  ;;  %v2872_v37 = vpack.c.bf16 %v793_v39, %v792_v30  ;;  %v596_v5 = vadd.f32 %v3486_v23, %v3568_v27 }
 0x150   :  { %v795_v10 = vmax.f32 %v3514_v63, %v779_v33  ;;  %v749_v20 = vmax.f32 %v651_v35, 0.0  ;;  %v735_v63 = vmax.f32 %v581_v38, 0.0  ;;  %v739_v32 = vmax.f32 %v601_v3, 0.0  ;;  %v2949_v3 = vld [vmem:[%s4192_s6 + $0x10c] ss:$16 sps:$4 sm:$0xff]  }
 0x151   :  { %v794_v41 = vmax.f32 %v3517_v2, %v778_v19  ;;  %v748_v44 = vmax.f32 %v646_v9, 0.0  ;;  %v2815_v45 = vpop.f32.mrb[56].mxu0  ;;  %2873 = vmatpush3.bf16.msra.mxu1 %v2872_v37  ;;  %v611_v33 = vadd.f32 %v3570_v17, %v3486_v23  ;;  %v738_v35 = vmax.f32 %v596_v5, 0.0  ;;  %v2967_v5 = vld [vmem:[%s4192_s6 + $0x14c] ss:$16 sps:$4 sm:$0xff]  }
 0x152   :  { %v781_v47 = vmax.f32 %v733_v51, %v749_v20  ;;  %v661_v48 = vadd.f32 %v2815_v45, %v3486_v23  ;;  %v655_v21 = vpop.f32.mrb[57].mxu0  ;;  %2874 = vmatprep.subr.bf16.mxu1 %v3144_v7  ;;  %v606_v36 = vadd.f32 %v3486_v23, %v3572_v28 }
 0x153   :  { %v780_v49 = vmax.f32 %v732_v54, %v748_v44  ;;  %v656_v11 = vadd.f32 %v3486_v23, %v655_v21  ;;  %v2875_v50 = vpack.c.bf16 %v795_v10, %v794_v41  ;;  %v741_v54 = vmax.f32 %v611_v33, 0.0  ;;  %v2914_v33 = vld [vmem:[%s4189_s4 + $0x8] ss:$16 sps:$4 sm:$0xff]  }
 0x154   :  { %v797_v13 = vmax.f32 %v3522_v12, %v781_v47  ;;  %v751_v2 = vmax.f32 %v661_v48, 0.0  ;;  %v740_v28 = vmax.f32 %v606_v36, 0.0  ;;  %v2917_v36 = vld [vmem:[%s4189_s4 + $0x28] ss:$16 sps:$4 sm:$0xff]  }
 0x155   :  { %v796_v56 = vmax.f32 %v3525_v15, %v780_v49  ;;  %v750_v57 = vmax.f32 %v656_v11, 0.0  ;;  %v2818_v59 = vpop.f32.mrb[58].mxu0  ;;  %2876 = vmatpush3.bf16.msra.mxu1 %v2875_v50  ;;  %v2908_v11 = vld [vmem:[%s4189_s4] ss:$16 sps:$4 sm:$0xff]   ;;  %v3147_v50 = vmov 0  }
 0x156   :  { %v783_v60 = vmax.f32 %v735_v63, %v751_v2  ;;  %v671_v61 = vadd.f32 %v2818_v59, %v3486_v23  ;;  %v665_v62 = vpop.f32.mrb[59].mxu0  ;;  %2877 = vmatprep.subr.bf16.mxu1 %v3144_v7  ;;  %v2920_v63 = vld [vmem:[%s4192_s6 + $0x8] ss:$16 sps:$4 sm:$0xff]   ;;  %v2934_v59 = vld [vmem:[%s4192_s6 + $0x8c] ss:$16 sps:$4 sm:$0xff]  }
 0x157   :  { %v782_v24 = vmax.f32 %v734_v52, %v750_v57  ;;  %v666_v14 = vadd.f32 %v3486_v23, %v665_v62  ;;  %v2878_v12 = vpack.c.bf16 %v797_v13, %v796_v56  ;;  %v2925_v13 = vld [vmem:[%s4192_s6 + $0x2c] ss:$16 sps:$4 sm:$0xff]   ;;  %1915 = vmatpush1.bf16.msra.mxu0 %v2920_v63  ;;  %v2923_v2 = vld [vmem:[%s4192_s6 + $0x28] ss:$16 sps:$4 sm:$0xff]   ;;  %v3009_v63 = vld [vmem:[%s4192_s6 + $0x1c4] ss:$16 sps:$4 sm:$0xff]  }
 0x158   :  { %v799_v16 = vmax.f32 %v3532_v31, %v783_v60  ;;  %v753_v15 = vmax.f32 %v671_v61, 0.0  ;;  %1916 = vmatprep.subr.bf16.mxu0 %v2925_v13  ;;  %v2928_v52 = vld [vmem:[%s4192_s6 + $0x4c] ss:$16 sps:$4 sm:$0xff]   ;;  %v2929_v57 = vld [vmem:[%s4192_s6 + $0x68] ss:$16 sps:$4 sm:$0xff]  }
 0x159   :  { %v798_v6 = vmax.f32 %v3535_v34, %v782_v24  ;;  %v752_v39 = vmax.f32 %v666_v14, 0.0  ;;  %v2821_v18 = vpop.f32.mrb[60].mxu0  ;;  %2879 = vmatpush3.bf16.msra.mxu1 %v2878_v12  ;;  %v2931_v56 = vld [vmem:[%s4192_s6 + $0x6c] ss:$16 sps:$4 sm:$0xff]   ;;  %v2932_v60 = vld [vmem:[%s4192_s6 + $0x88] ss:$16 sps:$4 sm:$0xff]  }
 0x15a   :  { %v785_v29 = vmax.f32 %v737_v0, %v753_v15  ;;  %v681_v8 = vadd.f32 %v2821_v18, %v3486_v23  ;;  %v675_v30 = vpop.f32.mrb[61].mxu0  ;;  %2880 = vmatprep.subr.bf16.mxu1 %v3144_v7  ;;  %v2937_v61 = vld [vmem:[%s4192_s6 + $0xac] ss:$16 sps:$4 sm:$0xff]   ;;  %v2935_v62 = vld [vmem:[%s4192_s6 + $0xa8] ss:$16 sps:$4 sm:$0xff]  }
 0x15b   :  { %v784_v42 = vmax.f32 %v736_v4, %v752_v39  ;;  %v676_v26 = vadd.f32 %v3486_v23, %v675_v30  ;;  %v2881_v31 = vpack.c.bf16 %v799_v16, %v798_v6  ;;  %1917 = vmatpush1.bf16.msra.mxu0 %v2923_v2  ;;  %v2940_v24 = vld [vmem:[%s4192_s6 + $0xcc] ss:$16 sps:$4 sm:$0xff]   ;;  %v2938_v14 = vld [vmem:[%s4192_s6 + $0xc8] ss:$16 sps:$4 sm:$0xff]   ;;  %v3015_v2 = vld [vmem:[%s4192_s6 + $0x1e4] ss:$16 sps:$4 sm:$0xff]  }
 0x15c   :  { %v801_v27 = vmax.f32 %v3542_v43, %v785_v29  ;;  %v755_v34 = vmax.f32 %v681_v8, 0.0  ;;  %1918 = vmatprep.subr.bf16.mxu0 %v2928_v52  ;;  %v2943_v12 = vld [vmem:[%s4192_s6 + $0xec] ss:$16 sps:$4 sm:$0xff]   ;;  %v2941_v0 = vld [vmem:[%s4192_s6 + $0xe8] ss:$16 sps:$4 sm:$0xff]  }
 0x15d   :  { %v800_v19 = vmax.f32 %v3545_v46, %v784_v42  ;;  %v754_v9 = vmax.f32 %v676_v26, 0.0  ;;  %v2824_v37 = vpop.f32.mrb[62].mxu0  ;;  %2882 = vmatpush3.bf16.msra.mxu1 %v2881_v31  ;;  %v2947_v16 = vld [vmem:[%s4192_s6 + $0x108] ss:$16 sps:$4 sm:$0xff]   ;;  %v2958_v15 = vld [vmem:[%s4192_s6 + $0x12c] ss:$16 sps:$4 sm:$0xff]  }
 0x15e   :  { %v787_v51 = vmax.f32 %v739_v32, %v755_v34  ;;  %v691_v38 = vadd.f32 %v2824_v37, %v3486_v23  ;;  %v685_v10 = vpop.f32.mrb[63].mxu0  ;;  %2883 = vmatprep.subr.bf16.mxu1 %v3144_v7  ;;  %v2956_v4 = vld [vmem:[%s4192_s6 + $0x128] ss:$16 sps:$4 sm:$0xff]   ;;  %v2976_v39 = vld [vmem:[%s4192_s6 + $0x16c] ss:$16 sps:$4 sm:$0xff]  }
 0x15f   :  { %v786_v20 = vmax.f32 %v738_v35, %v754_v9  ;;  %v686_v17 = vadd.f32 %v3486_v23, %v685_v10  ;;  %v2884_v43 = vpack.c.bf16 %v801_v27, %v800_v19  ;;  %v2910_v23 = vld [vmem:[%s4189_s4 + $0x4] ss:$16 sps:$4 sm:$0xff]   ;;  %1919 = vmatpush1.bf16.msra.mxu0 %v2926_v53  ;;  %v2965_v6 = vld [vmem:[%s4192_s6 + $0x148] ss:$16 sps:$4 sm:$0xff]   ;;  %v2985_v29 = vld [vmem:[%s4192_s6 + $0x18c] ss:$16 sps:$4 sm:$0xff]  }
 0x160   :  { %v803_v40 = vmax.f32 %v3552_v55, %v787_v51  ;;  %v757_v41 = vmax.f32 %v691_v38, 0.0  ;;  %1920 = vmatprep.subr.bf16.mxu0 %v2931_v56  ;;  %v2974_v18 = vld [vmem:[%s4192_s6 + $0x168] ss:$16 sps:$4 sm:$0xff]   ;;  %v2994_v30 = vld [vmem:[%s4192_s6 + $0x1ac] ss:$16 sps:$4 sm:$0xff]  }
 0x161   :  { %v802_v46 = vmax.f32 %v3555_v58, %v786_v20  ;;  %v756_v44 = vmax.f32 %v686_v17, 0.0  ;;  %2885 = vmatpush3.bf16.msra.mxu1 %v2884_v43  ;;  %v806_v58 = vld [vmem:[%s4191_s3] sm:$0xff]  ;;  %v2983_v8 = vld [vmem:[%s4192_s6 + $0x188] ss:$16 sps:$4 sm:$0xff]   ;;  %v3003_v26 = vld [vmem:[%s4192_s6 + $0x1cc] ss:$16 sps:$4 sm:$0xff]  }
 0x162   :  { %v789_v45 = vmax.f32 %v741_v54, %v757_v41  ;;  %2886 = vmatprep.subr.bf16.mxu1 %v3144_v7  ;;  %v2992_v42 = vld [vmem:[%s4192_s6 + $0x1a8] ss:$16 sps:$4 sm:$0xff]   ;;  %v2919_v35 = vld [vmem:[%s4189_s4 + $0x2c] ss:$16 sps:$4 sm:$0xff]   ;;  %v2946_v19 = vld [vmem:[%s4192_s6 + $0x4] ss:$16 sps:$4 sm:$0xff]  }
 0x163   :  { %v788_v47 = vmax.f32 %v740_v28, %v756_v44  ;;  %v2887_v48 = vpack.c.bf16 %v803_v40, %v802_v46  ;;  %1921 = vmatpush1.bf16.msra.mxu0 %v2929_v57  ;;  %v3001_v31 = vld [vmem:[%s4192_s6 + $0x1c8] ss:$16 sps:$4 sm:$0xff]   ;;  %v2944_v9 = vld [vmem:[%s4192_s6] ss:$16 sps:$4 sm:$0xff]   ;;  %v2952_v37 = vld [vmem:[%s4192_s6 + $0x24] ss:$16 sps:$4 sm:$0xff]  }
 0x164   :  { %v805_v21 = vmax.f32 %v3558_v1, %v789_v45  ;;  %v2913_v1 = vld [vmem:[%s4189_s4 + $0x24] ss:$16 sps:$4 sm:$0xff]   ;;  %1922 = vmatprep.subr.bf16.mxu0 %v2934_v59  ;;  %v2950_v51 = vld [vmem:[%s4192_s6 + $0x20] ss:$16 sps:$4 sm:$0xff]   ;;  %v3012_v13 = vld [vmem:[%s4192_s6 + $0x1ec] ss:$16 sps:$4 sm:$0xff]   ;;  %v888_v59 = vlaneseq }
 0x165   :  { %v804_v49 = vmax.f32 %v3560_v25, %v788_v47  ;;  %2888 = vmatpush3.bf16.msra.mxu1 %v2887_v48  ;;  %v2916_v25 = vld [vmem:[%s4189_s4 + $0xc] ss:$16 sps:$4 sm:$0xff]   ;;  %v2955_v38 = vld [vmem:[%s4192_s6 + $0x44] ss:$16 sps:$4 sm:$0xff]   ;;  %v2953_v10 = vld [vmem:[%s4192_s6 + $0x40] ss:$16 sps:$4 sm:$0xff]  }
 0x166   :  { %2889 = vmatprep.subr.bf16.mxu1 %v3144_v7  ;;  %v2911_v7 = vld [vmem:[%s4189_s4 + $0x20] ss:$16 sps:$4 sm:$0xff]   ;;  %v2961_v20 = vld [vmem:[%s4192_s6 + $0x64] ss:$16 sps:$4 sm:$0xff]   ;;  %v3010_v52 = vld [vmem:[%s4192_s6 + $0x1e8] ss:$16 sps:$4 sm:$0xff]  }
 0x167   :  { %v2890_v55 = vpack.c.bf16 %v805_v21, %v804_v49  ;;  %1923 = vmatpush1.bf16.msra.mxu0 %v2932_v60  ;;  %v2959_v17 = vld [vmem:[%s4192_s6 + $0x60] ss:$16 sps:$4 sm:$0xff]   ;;  %v2964_v43 = vld [vmem:[%s4192_s6 + $0x84] ss:$16 sps:$4 sm:$0xff]   ;;  %v3021_v57 = vld [vmem:[%s4192_s6 + $0x20c] ss:$16 sps:$4 sm:$0xff]  }
 0x168   :  { %1924 = vmatprep.subr.bf16.mxu0 %v2937_v61  ;;  %v2962_v54 = vld [vmem:[%s4192_s6 + $0x80] ss:$16 sps:$4 sm:$0xff]   ;;  %v2970_v40 = vld [vmem:[%s4192_s6 + $0xa4] ss:$16 sps:$4 sm:$0xff]   ;;  %v3862_v60 = vshrl.u32 %v888_v59, 7 }
 0x169   :  { %2891 = vmatpush3.bf16.msra.mxu1 %v2890_v55  ;;  %v2968_v41 = vld [vmem:[%s4192_s6 + $0xa0] ss:$16 sps:$4 sm:$0xff]   ;;  %v2973_v28 = vld [vmem:[%s4192_s6 + $0xc4] ss:$16 sps:$4 sm:$0xff]  }
 0x16a   :  { %952 = vmatprep.subr.bf16.mxu1 %v2910_v23  ;;  %v2971_v46 = vld [vmem:[%s4192_s6 + $0xc0] ss:$16 sps:$4 sm:$0xff]   ;;  %v2979_v44 = vld [vmem:[%s4192_s6 + $0xe4] ss:$16 sps:$4 sm:$0xff]   ;;  %v890_v61 = vsub.s32 0, %v3862_v60 }
 0x16b   :  { %1925 = vmatpush1.bf16.msra.mxu0 %v2935_v62  ;;  %v2977_v45 = vld [vmem:[%s4192_s6 + $0xe0] ss:$16 sps:$4 sm:$0xff]   ;;  %v2982_v47 = vld [vmem:[%s4192_s6 + $0x104] ss:$16 sps:$4 sm:$0xff]  }
 0x16c   :  { %2858 = vmatmul.mubr.f32.vlgmr.msra.gmra.mrb[0].mxu1 %v806_v58  ;;  %1926 = vmatprep.subr.bf16.mxu0 %v2940_v24  ;;  %v2980_v48 = vld [vmem:[%s4192_s6 + $0x100] ss:$16 sps:$4 sm:$0xff]   ;;  %v2988_v21 = vld [vmem:[%s4192_s6 + $0x124] ss:$16 sps:$4 sm:$0xff]   ;;  %v894_v24 = vsub.s32 1, %v3862_v60 }
 0x16d   :  { %953 = vmatpush1.bf16.msra.mxu1 %v2908_v11  ;;  %984 = vmatprep.mubr.bf16.mxu1 %v3147_v50  ;;  %v2986_v49 = vld [vmem:[%s4192_s6 + $0x120] ss:$16 sps:$4 sm:$0xff]   ;;  %v2991_v23 = vld [vmem:[%s4192_s6 + $0x144] ss:$16 sps:$4 sm:$0xff]  }
 0x16e   :  { %954 = vmatprep.subr.bf16.mxu1 %v2913_v1  ;;  %v2989_v55 = vld [vmem:[%s4192_s6 + $0x140] ss:$16 sps:$4 sm:$0xff]   ;;  %v2997_v58 = vld [vmem:[%s4192_s6 + $0x164] ss:$16 sps:$4 sm:$0xff]  }
 0x16f   :  { %1927 = vmatpush1.bf16.msra.mxu0 %v2938_v14  ;;  %v2995_v11 = vld [vmem:[%s4192_s6 + $0x160] ss:$16 sps:$4 sm:$0xff]   ;;  %v3000_v1 = vld [vmem:[%s4192_s6 + $0x184] ss:$16 sps:$4 sm:$0xff]  }
 0x170   :  { %1928 = vmatprep.subr.bf16.mxu0 %v2943_v12  ;;  %v3013_v53 = vld [vmem:[%s4192_s6 + $0x1e0] ss:$16 sps:$4 sm:$0xff]   ;;  %v3018_v56 = vld [vmem:[%s4192_s6 + $0x204] ss:$16 sps:$4 sm:$0xff]  }
 0x171   :  { %955 = vmatpush1.bf16.msra.mxu1 %v2911_v7  ;;  %v2998_v7 = vld [vmem:[%s4192_s6 + $0x180] ss:$16 sps:$4 sm:$0xff]   ;;  %v3078_v59 = vld [vmem:[%s4192_s6 + $0x344] ss:$16 sps:$4 sm:$0xff]  }
 0x172   :  { %993 = vmatprep.subr.bf16.mxu1 %v2916_v25  ;;  %v3006_v25 = vld [vmem:[%s4192_s6 + $0x1a4] ss:$16 sps:$4 sm:$0xff]   ;;  %v3868_v62 = vld [vmem:[%s4194_s5] sm:$0xf] }
 0x173   :  { %1929 = vmatpush1.bf16.msra.mxu0 %v2941_v0  ;;  %v891_v14 = vrot.slane %v3868_v62, %v890_v61  ;;  %v895_v12 = vrot.slane %v3868_v62, %v894_v24 }
 0x174   :  { %1930 = vmatprep.subr.bf16.mxu0 %v2949_v3 }
 0x177   :  { %1931 = vmatpush1.bf16.msra.mxu0 %v2947_v16 }
 0x178   :  { %1932 = vmatprep.subr.bf16.mxu0 %v2958_v15 }
 0x17b   :  { %1933 = vmatpush1.bf16.msra.mxu0 %v2956_v4 }
 0x17c   :  { %1934 = vmatprep.subr.bf16.mxu0 %v2967_v5  ;;  %v902_v5 = vsub.s32 3, %v3862_v60 }
 0x17f   :  { %1935 = vmatpush1.bf16.msra.mxu0 %v2965_v6 }
 0x180   :  { %1936 = vmatprep.subr.bf16.mxu0 %v2976_v39 }
 0x183   :  { %1937 = vmatpush1.bf16.msra.mxu0 %v2974_v18 }
 0x184   :  { %1938 = vmatprep.subr.bf16.mxu0 %v2985_v29 }
 0x187   :  { %1939 = vmatpush1.bf16.msra.mxu0 %v2983_v8  ;;  %v3016_v8 = vld [vmem:[%s4192_s6 + $0x200] ss:$16 sps:$4 sm:$0xff]  }
 0x188   :  { %1940 = vmatprep.subr.bf16.mxu0 %v2994_v30  ;;  %v3019_v30 = vld [vmem:[%s4192_s6 + $0x208] ss:$16 sps:$4 sm:$0xff]  }
 0x18b   :  { %1941 = vmatpush1.bf16.msra.mxu0 %v2992_v42  ;;  %v903_v42 = vrot.slane %v3868_v62, %v902_v5 }
 0x18c   :  { %1942 = vmatprep.subr.bf16.mxu0 %v3003_v26 }
 0x18f   :  { %1943 = vmatpush1.bf16.msra.mxu0 %v3001_v31  ;;  %v3024_v31 = vld [vmem:[%s4192_s6 + $0x224] ss:$16 sps:$4 sm:$0xff]  }
 0x190   :  { %1944 = vmatprep.subr.bf16.mxu0 %v3012_v13  ;;  %v3064_v13 = vld [vmem:[%s4192_s6 + $0x300] ss:$16 sps:$4 sm:$0xff]  }
 0x193   :  { %1945 = vmatpush1.bf16.msra.mxu0 %v3010_v52  ;;  %v3072_v52 = vld [vmem:[%s4192_s6 + $0x324] ss:$16 sps:$4 sm:$0xff]  }
 0x194   :  { %1955 = vmatprep.subr.bf16.mxu0 %v3021_v57  ;;  %v3073_v57 = vld [vmem:[%s4192_s6 + $0x328] ss:$16 sps:$4 sm:$0xff]  }
 0x23f   :  { %v873_v32 = vpop.f32.mrb[0].mxu1 }
 0x240   :  { %v877_v27 = vpack.c.bf16 %v873_v32, %v873_v32  ;;  %v2859_v34 = vpop.f32.mrb[1].mxu1  ;;  %v3027_v32 = vld [vmem:[%s4192_s6 + $0x22c] ss:$16 sps:$4 sm:$0xff]  }
 0x242   :  { %2426 = vmatmul.mubr.msk.bf16.vlgmr.msra.gmra.mrb[4].mxu1 %vm948_vm3, %v877_v27 }
 0x243   :  { %994 = vmatpush1.bf16.msra.mxu1 %v2914_v33  ;;  %1025 = vmatprep.mubr.bf16.mxu1 %v3147_v50  ;;  %v3004_v50 = vld [vmem:[%s4192_s6 + $0x1a0] ss:$16 sps:$4 sm:$0xff]  }
 0x244   :  { %995 = vmatprep.subr.bf16.mxu1 %v2919_v35 }
 0x247   :  { %996 = vmatpush1.bf16.msra.mxu1 %v2917_v36  ;;  %v3022_v36 = vld [vmem:[%s4192_s6 + $0x220] ss:$16 sps:$4 sm:$0xff]  }
 0x248   :  { %1832 = vmatprep.subr.bf16.mxu1 %v2946_v19  ;;  %v3025_v19 = vld [vmem:[%s4192_s6 + $0x228] ss:$16 sps:$4 sm:$0xff]  }
 0x24a   :  { %2427 = vmatmul.mubr.msk.bf16.vlgmr.msra.gmra.mrb[8].mxu1 %vm948_vm3, %v877_v27 }
 0x24b   :  { %1833 = vmatpush1.bf16.msra.mxu1 %v2944_v9 }
 0x24c   :  { %1834 = vmatprep.subr.bf16.mxu1 %v2952_v37  ;;  %v3030_v37 = vld [vmem:[%s4192_s6 + $0x244] ss:$16 sps:$4 sm:$0xff]  }
 0x24f   :  { %1835 = vmatpush1.bf16.msra.mxu1 %v2950_v51  ;;  %v3033_v51 = vld [vmem:[%s4192_s6 + $0x24c] ss:$16 sps:$4 sm:$0xff]  }
 0x250   :  { %1836 = vmatprep.subr.bf16.mxu1 %v2955_v38 }
 0x253   :  { %1837 = vmatpush1.bf16.msra.mxu1 %v2953_v10 }
 0x254   :  { %1838 = vmatprep.subr.bf16.mxu1 %v2961_v20  ;;  %v3028_v20 = vld [vmem:[%s4192_s6 + $0x240] ss:$16 sps:$4 sm:$0xff]  }
 0x257   :  { %1839 = vmatpush1.bf16.msra.mxu1 %v2959_v17  ;;  %v3031_v17 = vld [vmem:[%s4192_s6 + $0x248] ss:$16 sps:$4 sm:$0xff]  }
 0x258   :  { %1840 = vmatprep.subr.bf16.mxu1 %v2964_v43  ;;  %v3036_v43 = vld [vmem:[%s4192_s6 + $0x264] ss:$16 sps:$4 sm:$0xff]  }
 0x25b   :  { %1841 = vmatpush1.bf16.msra.mxu1 %v2962_v54  ;;  %v3039_v54 = vld [vmem:[%s4192_s6 + $0x26c] ss:$16 sps:$4 sm:$0xff]  }
 0x25c   :  { %1842 = vmatprep.subr.bf16.mxu1 %v2970_v40  ;;  %v3034_v40 = vld [vmem:[%s4192_s6 + $0x260] ss:$16 sps:$4 sm:$0xff]  }
 0x25f   :  { %1843 = vmatpush1.bf16.msra.mxu1 %v2968_v41  ;;  %v3037_v41 = vld [vmem:[%s4192_s6 + $0x268] ss:$16 sps:$4 sm:$0xff]  }
 0x260   :  { %1844 = vmatprep.subr.bf16.mxu1 %v2973_v28  ;;  %v3042_v28 = vld [vmem:[%s4192_s6 + $0x284] ss:$16 sps:$4 sm:$0xff]  }
 0x263   :  { %1845 = vmatpush1.bf16.msra.mxu1 %v2971_v46  ;;  %v3045_v46 = vld [vmem:[%s4192_s6 + $0x28c] ss:$16 sps:$4 sm:$0xff]  }
 0x264   :  { %1846 = vmatprep.subr.bf16.mxu1 %v2979_v44  ;;  %v3040_v44 = vld [vmem:[%s4192_s6 + $0x280] ss:$16 sps:$4 sm:$0xff]  }
 0x267   :  { %1847 = vmatpush1.bf16.msra.mxu1 %v2977_v45  ;;  %v3043_v45 = vld [vmem:[%s4192_s6 + $0x288] ss:$16 sps:$4 sm:$0xff]  }
 0x268   :  { %1848 = vmatprep.subr.bf16.mxu1 %v2982_v47  ;;  %v3048_v47 = vld [vmem:[%s4192_s6 + $0x2a4] ss:$16 sps:$4 sm:$0xff]  }
 0x26b   :  { %1849 = vmatpush1.bf16.msra.mxu1 %v2980_v48  ;;  %v3051_v48 = vld [vmem:[%s4192_s6 + $0x2ac] ss:$16 sps:$4 sm:$0xff]  }
 0x26c   :  { %1850 = vmatprep.subr.bf16.mxu1 %v2988_v21  ;;  %v3046_v21 = vld [vmem:[%s4192_s6 + $0x2a0] ss:$16 sps:$4 sm:$0xff]  }
 0x26f   :  { %1851 = vmatpush1.bf16.msra.mxu1 %v2986_v49  ;;  %v3049_v49 = vld [vmem:[%s4192_s6 + $0x2a8] ss:$16 sps:$4 sm:$0xff]  }
 0x270   :  { %1852 = vmatprep.subr.bf16.mxu1 %v2991_v23  ;;  %v3054_v23 = vld [vmem:[%s4192_s6 + $0x2c4] ss:$16 sps:$4 sm:$0xff]  }
 0x273   :  { %1853 = vmatpush1.bf16.msra.mxu1 %v2989_v55  ;;  %v3057_v55 = vld [vmem:[%s4192_s6 + $0x2cc] ss:$16 sps:$4 sm:$0xff]  }
 0x274   :  { %1854 = vmatprep.subr.bf16.mxu1 %v2997_v58  ;;  %v3052_v58 = vld [vmem:[%s4192_s6 + $0x2c0] ss:$16 sps:$4 sm:$0xff]  }
 0x277   :  { %1855 = vmatpush1.bf16.msra.mxu1 %v2995_v11  ;;  %v3055_v11 = vld [vmem:[%s4192_s6 + $0x2c8] ss:$16 sps:$4 sm:$0xff]  }
 0x278   :  { %1856 = vmatprep.subr.bf16.mxu1 %v3000_v1  ;;  %v3060_v1 = vld [vmem:[%s4192_s6 + $0x2e4] ss:$16 sps:$4 sm:$0xff]  }
 0x27b   :  { %1857 = vmatpush1.bf16.msra.mxu1 %v2998_v7  ;;  %v3063_v7 = vld [vmem:[%s4192_s6 + $0x2ec] ss:$16 sps:$4 sm:$0xff]  }
 0x27c   :  { %1858 = vmatprep.subr.bf16.mxu1 %v3006_v25  ;;  %v3058_v25 = vld [vmem:[%s4192_s6 + $0x2e0] ss:$16 sps:$4 sm:$0xff]  }
 0x27f   :  { %1859 = vmatpush1.bf16.msra.mxu1 %v3004_v50  ;;  %v3061_v50 = vld [vmem:[%s4192_s6 + $0x2e8] ss:$16 sps:$4 sm:$0xff]  }
 0x280   :  { %1860 = vmatprep.subr.bf16.mxu1 %v3009_v63  ;;  %v3066_v63 = vld [vmem:[%s4192_s6 + $0x304] ss:$16 sps:$4 sm:$0xff]  }
 0x283   :  { %1861 = vmatpush1.bf16.msra.mxu1 %v3007_v22  ;;  %v3069_v22 = vld [vmem:[%s4192_s6 + $0x30c] ss:$16 sps:$4 sm:$0xff]  }
 0x284   :  { %1862 = vmatprep.subr.bf16.mxu1 %v3015_v2  ;;  %v3067_v2 = vld [vmem:[%s4192_s6 + $0x308] ss:$16 sps:$4 sm:$0xff]  }
 0x287   :  { %1863 = vmatpush1.bf16.msra.mxu1 %v3013_v53  ;;  %v3075_v53 = vld [vmem:[%s4192_s6 + $0x32c] ss:$16 sps:$4 sm:$0xff]  }
 0x288   :  { %1873 = vmatprep.subr.bf16.mxu1 %v3018_v56  ;;  %v3070_v56 = vld [vmem:[%s4192_s6 + $0x320] ss:$16 sps:$4 sm:$0xff]  }
 0x315   :  { %v986_v0 = vpop.f32.mrb[4].mxu1 }
 0x316   :  { %v987_v3 = vadd.f32 %v986_v0, %v891_v14  ;;  %v988_v16 = vpop.f32.mrb[5].mxu1  ;;  %v3081_v14 = vld [vmem:[%s4192_s6 + $0x34c] ss:$16 sps:$4 sm:$0xff]   ;;  %v3079_v0 = vld [vmem:[%s4192_s6 + $0x348] ss:$16 sps:$4 sm:$0xff]  }
 0x317   :  { %v989_v15 = vadd.f32 %v988_v16, %v895_v12  ;;  %v990_v4 = vpop.f32.mrb[6].mxu1  ;;  %v3076_v12 = vld [vmem:[%s4192_s6 + $0x340] ss:$16 sps:$4 sm:$0xff]   ;;  %v3087_v16 = vld [vmem:[%s4192_s6 + $0x36c] ss:$16 sps:$4 sm:$0xff]  }
 0x318   :  { %v1034_v6 = vmax.f32 %v987_v3, 0.0  ;;  %v991_v39 = vpop.f32.mrb[7].mxu1  ;;  %v3084_v3 = vld [vmem:[%s4192_s6 + $0x364] ss:$16 sps:$4 sm:$0xff]   ;;  %v3085_v4 = vld [vmem:[%s4192_s6 + $0x368] ss:$16 sps:$4 sm:$0xff]  }
 0x319   :  { %v1035_v18 = vmax.f32 %v989_v15, 0.0  ;;  %v3082_v15 = vld [vmem:[%s4192_s6 + $0x360] ss:$16 sps:$4 sm:$0xff]   ;;  %v3093_v39 = vld [vmem:[%s4192_s6 + $0x38c] ss:$16 sps:$4 sm:$0xff]  }
 0x31a   :  { %v1038_v26 = vpack.c.bf16 %v1034_v6, %v1034_v6  ;;  %v3090_v6 = vld [vmem:[%s4192_s6 + $0x384] ss:$16 sps:$4 sm:$0xff]  }
 0x31b   :  { %v1039_v29 = vpack.c.bf16 %v1035_v18, %v1035_v18  ;;  %v3088_v18 = vld [vmem:[%s4192_s6 + $0x380] ss:$16 sps:$4 sm:$0xff]  }
 0x31d   :  { %v3893_v33 = vpop.f32.mrb[8].mxu1  ;;  %1864 = vmatprep.mubr.bf16.mxu1 %v1039_v29  ;;  %1946 = vmatprep.mubr.bf16.mxu0 %v1039_v29  ;;  %v3091_v29 = vld [vmem:[%s4192_s6 + $0x388] ss:$16 sps:$4 sm:$0xff]  }
 0x31e   :  { %v1029_v27 = vpop.f32.mrb[9].mxu1  ;;  %1865 = vmatmul.mubr.bf16.vlgmr.msra.gmra.mrb[12].mxu1 %v1038_v26  ;;  %1947 = vmatmul.mubr.bf16.vlgmr.msra.gmra.mrb[64].mxu0 %v1038_v26  ;;  %v3094_v26 = vld [vmem:[%s4192_s6 + $0x3a0] ss:$16 sps:$4 sm:$0xff]  }
 0x31f   :  { %v1030_v34 = vadd.f32 %v1029_v27, %v903_v42  ;;  %1874 = vmatpush1.bf16.msra.mxu1 %v3016_v8  ;;  %1956 = vmatpush1.bf16.msra.mxu0 %v3019_v30  ;;  %v1031_v35 = vpop.f32.mrb[10].mxu1  ;;  %v898_v8 = vsub.s32 2, %v3862_v60  ;;  %v3096_v30 = vld [vmem:[%s4192_s6 + $0x3a4] ss:$16 sps:$4 sm:$0xff]   ;;  %v3099_v42 = vld [vmem:[%s4192_s6 + $0x3ac] ss:$16 sps:$4 sm:$0xff]  }
 0x320   :  { %v1032_v9 = vpop.f32.mrb[11].mxu1  ;;  %1875 = vmatprep.subr.bf16.mxu1 %v3024_v31  ;;  %1957 = vmatprep.subr.bf16.mxu0 %v3027_v32  ;;  %v3097_v31 = vld [vmem:[%s4192_s6 + $0x3a8] ss:$16 sps:$4 sm:$0xff]   ;;  %v3102_v27 = vld [vmem:[%s4192_s6 + $0x3c4] ss:$16 sps:$4 sm:$0xff]  }
 0x321   :  { %v1037_v38 = vmax.f32 %v1030_v34, 0.0  ;;  %v899_v32 = vrot.slane %v3868_v62, %v898_v8  ;;  %v3105_v34 = vld [vmem:[%s4192_s6 + $0x3cc] ss:$16 sps:$4 sm:$0xff]   ;;  %v3100_v35 = vld [vmem:[%s4192_s6 + $0x3c0] ss:$16 sps:$4 sm:$0xff]  }
 0x322   :  { %v3103_v62 = vld [vmem:[%s4192_s6 + $0x3c8] ss:$16 sps:$4 sm:$0xff]   ;;  %v3111_v9 = vld [vmem:[%s4192_s6 + $0x3ec] ss:$16 sps:$4 sm:$0xff]  }
 0x323   :  { %v1041_v10 = vpack.c.bf16 %v1037_v38, %v1037_v38  ;;  %1876 = vmatpush1.bf16.msra.mxu1 %v3022_v36  ;;  %1958 = vmatpush1.bf16.msra.mxu0 %v3025_v19  ;;  %v1028_v36 = vadd.f32 %v3893_v33, %v899_v32  ;;  %v3108_v19 = vld [vmem:[%s4192_s6 + $0x3e4] ss:$16 sps:$4 sm:$0xff]   ;;  %v3109_v33 = vld [vmem:[%s4192_s6 + $0x3e8] ss:$16 sps:$4 sm:$0xff]  }
 0x324   :  { %1877 = vmatprep.subr.bf16.mxu1 %v3030_v37  ;;  %1959 = vmatprep.subr.bf16.mxu0 %v3033_v51  ;;  %v3106_v37 = vld [vmem:[%s4192_s6 + $0x3e0] ss:$16 sps:$4 sm:$0xff]  }
 0x325   :  { %1905 = vmatprep.mubr.bf16.mxu1 %v1041_v10  ;;  %1987 = vmatprep.mubr.bf16.mxu0 %v1041_v10  ;;  %v1036_v51 = vmax.f32 %v1028_v36, 0.0  ;;  %v3112_v38 = vld [vmem:[%s4193_s8 + $0x40] sm:$0xff]  }
 0x326   :  { %v3113_v10 = vld [vmem:[%s4193_s8 + $0xc0] sm:$0xff]  }
 0x327   :  { %1878 = vmatpush1.bf16.msra.mxu1 %v3028_v20  ;;  %1960 = vmatpush1.bf16.msra.mxu0 %v3031_v17  ;;  %v3114_v20 = vld [vmem:[%s4193_s8] sm:$0xff]  }
 0x328   :  { %1879 = vmatprep.subr.bf16.mxu1 %v3036_v43  ;;  %1961 = vmatprep.subr.bf16.mxu0 %v3039_v54  ;;  %v3115_v17 = vld [vmem:[%s4193_s8 + $0x80] sm:$0xff]   ;;  %v1040_v43 = vpack.c.bf16 %v1036_v51, %v1036_v51  ;;  %v3116_v54 = vld [vmem:[%s4193_s8 + $0x48] sm:$0xff]  }
 0x32b   :  { %1880 = vmatpush1.bf16.msra.mxu1 %v3034_v40  ;;  %1962 = vmatpush1.bf16.msra.mxu0 %v3037_v41  ;;  %v3117_v40 = vld [vmem:[%s4193_s8 + $0xc8] sm:$0xff]  }
 0x32c   :  { %1881 = vmatprep.subr.bf16.mxu1 %v3042_v28  ;;  %1963 = vmatprep.subr.bf16.mxu0 %v3045_v46  ;;  %v3118_v41 = vld [vmem:[%s4193_s8 + $0x8] sm:$0xff]   ;;  %v3120_v46 = vld [vmem:[%s4193_s8 + $0x50] sm:$0xff]  }
 0x32d   :  { %v3119_v28 = vld [vmem:[%s4193_s8 + $0x88] sm:$0xff]  }
 0x32f   :  { %1882 = vmatpush1.bf16.msra.mxu1 %v3040_v44  ;;  %1964 = vmatpush1.bf16.msra.mxu0 %v3043_v45  ;;  %v3121_v44 = vld [vmem:[%s4193_s8 + $0xd0] sm:$0xff]  }
 0x330   :  { %1883 = vmatprep.subr.bf16.mxu1 %v3048_v47  ;;  %1965 = vmatprep.subr.bf16.mxu0 %v3051_v48  ;;  %v3122_v45 = vld [vmem:[%s4193_s8 + $0x10] sm:$0xff]   ;;  %v3124_v48 = vld [vmem:[%s4193_s8 + $0x58] sm:$0xff]  }
 0x331   :  { %v3123_v47 = vld [vmem:[%s4193_s8 + $0x90] sm:$0xff]  }
 0x333   :  { %1884 = vmatpush1.bf16.msra.mxu1 %v3046_v21  ;;  %1966 = vmatpush1.bf16.msra.mxu0 %v3049_v49  ;;  %v3125_v21 = vld [vmem:[%s4193_s8 + $0xd8] sm:$0xff]  }
 0x334   :  { %1885 = vmatprep.subr.bf16.mxu1 %v3054_v23  ;;  %1967 = vmatprep.subr.bf16.mxu0 %v3057_v55  ;;  %v3126_v49 = vld [vmem:[%s4193_s8 + $0x18] sm:$0xff]   ;;  %v3128_v55 = vld [vmem:[%s4193_s8 + $0x60] sm:$0xff]  }
 0x335   :  { %v3127_v23 = vld [vmem:[%s4193_s8 + $0x98] sm:$0xff]  }
 0x337   :  { %1886 = vmatpush1.bf16.msra.mxu1 %v3052_v58  ;;  %1968 = vmatpush1.bf16.msra.mxu0 %v3055_v11  ;;  %v3129_v58 = vld [vmem:[%s4193_s8 + $0xe0] sm:$0xff]  }
 0x338   :  { %1887 = vmatprep.subr.bf16.mxu1 %v3060_v1  ;;  %1969 = vmatprep.subr.bf16.mxu0 %v3063_v7  ;;  %v3130_v11 = vld [vmem:[%s4193_s8 + $0x20] sm:$0xff]   ;;  %v3132_v7 = vld [vmem:[%s4193_s8 + $0x68] sm:$0xff]  }
 0x339   :  { %v3131_v1 = vld [vmem:[%s4193_s8 + $0xa0] sm:$0xff]  }
 0x33b   :  { %1888 = vmatpush1.bf16.msra.mxu1 %v3058_v25  ;;  %1970 = vmatpush1.bf16.msra.mxu0 %v3061_v50  ;;  %v3133_v25 = vld [vmem:[%s4193_s8 + $0xe8] sm:$0xff]  }
 0x33c   :  { %1889 = vmatprep.subr.bf16.mxu1 %v3066_v63  ;;  %1971 = vmatprep.subr.bf16.mxu0 %v3069_v22  ;;  %v3134_v50 = vld [vmem:[%s4193_s8 + $0x28] sm:$0xff]   ;;  %v3136_v22 = vld [vmem:[%s4193_s8 + $0x70] sm:$0xff]  }
 0x33d   :  { %v3135_v63 = vld [vmem:[%s4193_s8 + $0xa8] sm:$0xff]  }
 0x33f   :  { %1890 = vmatpush1.bf16.msra.mxu1 %v3064_v13  ;;  %1972 = vmatpush1.bf16.msra.mxu0 %v3067_v2  ;;  %v3137_v13 = vld [vmem:[%s4193_s8 + $0xf0] sm:$0xff]  }
 0x340   :  { %1891 = vmatprep.subr.bf16.mxu1 %v3072_v52  ;;  %1973 = vmatprep.subr.bf16.mxu0 %v3075_v53  ;;  %v3138_v2 = vld [vmem:[%s4193_s8 + $0x30] sm:$0xff]   ;;  %v3140_v53 = vld [vmem:[%s4193_s8 + $0x78] sm:$0xff]  }
 0x341   :  { %v3139_v52 = vld [vmem:[%s4193_s8 + $0xb0] sm:$0xff]  }
 0x343   :  { %1892 = vmatpush1.bf16.msra.mxu1 %v3070_v56  ;;  %1974 = vmatpush1.bf16.msra.mxu0 %v3073_v57  ;;  %v3141_v56 = vld [vmem:[%s4193_s8 + $0xf8] sm:$0xff]  }
 0x344   :  { %1893 = vmatprep.subr.bf16.mxu1 %v3078_v59  ;;  %1975 = vmatprep.subr.bf16.mxu0 %v3081_v14  ;;  %v3142_v57 = vld [vmem:[%s4193_s8 + $0x38] sm:$0xff]   ;;  %v1170_v14 = vld [vmem:[%s4195_s7] sm:$0xf] }
 0x345   :  { %v3143_v59 = vld [vmem:[%s4193_s8 + $0xb8] sm:$0xff]  }
 0x347   :  { %1894 = vmatpush1.bf16.msra.mxu1 %v3076_v12  ;;  %1976 = vmatpush1.bf16.msra.mxu0 %v3079_v0  ;;  %v1175_v12 = vrot.slane %v1170_v14, %v890_v61  ;;  %v1183_v0 = vrot.slane %v1170_v14, %v898_v8 }
 0x348   :  { %1895 = vmatprep.subr.bf16.mxu1 %v3084_v3  ;;  %1977 = vmatprep.subr.bf16.mxu0 %v3087_v16  ;;  %v1179_v3 = vrot.slane %v1170_v14, %v894_v24  ;;  %v1187_v16 = vrot.slane %v1170_v14, %v902_v5 }
 0x34b   :  { %1896 = vmatpush1.bf16.msra.mxu1 %v3082_v15  ;;  %1978 = vmatpush1.bf16.msra.mxu0 %v3085_v4 }
 0x34c   :  { %1897 = vmatprep.subr.bf16.mxu1 %v3090_v6  ;;  %1979 = vmatprep.subr.bf16.mxu0 %v3093_v39 }
 0x34f   :  { %1898 = vmatpush1.bf16.msra.mxu1 %v3088_v18  ;;  %1980 = vmatpush1.bf16.msra.mxu0 %v3091_v29 }
 0x350   :  { %1899 = vmatprep.subr.bf16.mxu1 %v3096_v30  ;;  %1981 = vmatprep.subr.bf16.mxu0 %v3099_v42 }
 0x353   :  { %1900 = vmatpush1.bf16.msra.mxu1 %v3094_v26  ;;  %1982 = vmatpush1.bf16.msra.mxu0 %v3097_v31 }
 0x354   :  { %1901 = vmatprep.subr.bf16.mxu1 %v3102_v27  ;;  %1983 = vmatprep.subr.bf16.mxu0 %v3105_v34 }
 0x357   :  { %1902 = vmatpush1.bf16.msra.mxu1 %v3100_v35  ;;  %1984 = vmatpush1.bf16.msra.mxu0 %v3103_v62 }
 0x358   :  { %1903 = vmatprep.subr.bf16.mxu1 %v3108_v19  ;;  %1985 = vmatprep.subr.bf16.mxu0 %v3111_v9  ;;  %v2556_v9 = vld [vmem:[%s4196_s9] ss:$0 sm:$0xff] }
 0x35b   :  { %1904 = vmatpush1.bf16.msra.mxu1 %v3106_v37  ;;  %1986 = vmatpush1.bf16.msra.mxu0 %v3109_v33 }
 0x35c   :  { %2675 = vmatprep.subr.bf16.mxu1 %v3112_v38  ;;  %2697 = vmatprep.subr.bf16.mxu0 %v3113_v10 }
 0x35e   :  { %1906 = vmatmul.mubr.bf16.vlgmr.msra.gmra.mrb[12].mxu1 %v1040_v43  ;;  %1988 = vmatmul.mubr.bf16.vlgmr.msra.gmra.mrb[64].mxu0 %v1040_v43 }
 0x35f   :  { %2676 = vmatpush3.bf16.msra.mxu1 %v3114_v20  ;;  %2698 = vmatpush3.bf16.msra.mxu0 %v3115_v17 }
 0x360   :  { %2677 = vmatprep.subr.bf16.mxu1 %v3116_v54  ;;  %2699 = vmatprep.subr.bf16.mxu0 %v3117_v40 }
 0x363   :  { %2678 = vmatpush3.bf16.msra.mxu1 %v3118_v41  ;;  %2700 = vmatpush3.bf16.msra.mxu0 %v3119_v28 }
 0x364   :  { %2679 = vmatprep.subr.bf16.mxu1 %v3120_v46  ;;  %2701 = vmatprep.subr.bf16.mxu0 %v3121_v44 }
 0x367   :  { %2680 = vmatpush3.bf16.msra.mxu1 %v3122_v45  ;;  %2702 = vmatpush3.bf16.msra.mxu0 %v3123_v47 }
 0x368   :  { %2681 = vmatprep.subr.bf16.mxu1 %v3124_v48  ;;  %2703 = vmatprep.subr.bf16.mxu0 %v3125_v21 }
 0x36b   :  { %2682 = vmatpush3.bf16.msra.mxu1 %v3126_v49  ;;  %2704 = vmatpush3.bf16.msra.mxu0 %v3127_v23 }
 0x36c   :  { %2683 = vmatprep.subr.bf16.mxu1 %v3128_v55  ;;  %2705 = vmatprep.subr.bf16.mxu0 %v3129_v58 }
 0x36f   :  { %2684 = vmatpush3.bf16.msra.mxu1 %v3130_v11  ;;  %2706 = vmatpush3.bf16.msra.mxu0 %v3131_v1 }
 0x370   :  { %2685 = vmatprep.subr.bf16.mxu1 %v3132_v7  ;;  %2707 = vmatprep.subr.bf16.mxu0 %v3133_v25 }
 0x373   :  { %2686 = vmatpush3.bf16.msra.mxu1 %v3134_v50  ;;  %2708 = vmatpush3.bf16.msra.mxu0 %v3135_v63 }
 0x374   :  { %2687 = vmatprep.subr.bf16.mxu1 %v3136_v22  ;;  %2709 = vmatprep.subr.bf16.mxu0 %v3137_v13 }
 0x377   :  { %2688 = vmatpush3.bf16.msra.mxu1 %v3138_v2  ;;  %2710 = vmatpush3.bf16.msra.mxu0 %v3139_v52 }
 0x378   :  { %2689 = vmatprep.subr.bf16.mxu1 %v3140_v53  ;;  %2711 = vmatprep.subr.bf16.mxu0 %v3141_v56 }
 0x37b   :  { %2690 = vmatpush3.bf16.msra.mxu1 %v3142_v57  ;;  %2712 = vmatpush3.bf16.msra.mxu0 %v3143_v59 }
 0x431   :  { %v1907_v15 = vpop.f32.mrb[12].mxu1  ;;  %v1989_v4 = vpop.f32.mrb[64].mxu0 }
 0x432   :  { %v2892_v6 = vadd.f32 %v1907_v15, %v1175_v12  ;;  %v2894_v39 = vadd.f32 %v1989_v4, %v1183_v0  ;;  %v1909_v18 = vpop.f32.mrb[13].mxu1  ;;  %v1991_v29 = vpop.f32.mrb[65].mxu0 }
 0x433   :  { %v2893_v30 = vadd.f32 %v1909_v18, %v1179_v3  ;;  %v2895_v42 = vadd.f32 %v1991_v29, %v1187_v16  ;;  %v1911_v26 = vpop.f32.mrb[14].mxu1  ;;  %v1993_v31 = vpop.f32.mrb[66].mxu0 }
 0x434   :  { %v1996_v61 = vmax.f32 %v2892_v6, 0.0  ;;  %v1998_v32 = vmax.f32 %v2894_v39, 0.0  ;;  %v1912_v27 = vpop.f32.mrb[15].mxu1  ;;  %v1994_v8 = vpop.f32.mrb[67].mxu0 }
 0x435   :  { %v1997_v34 = vmax.f32 %v2893_v30, 0.0  ;;  %v1999_v35 = vmax.f32 %v2895_v42, 0.0 }
 0x436   :  { %v2000_v60 = vpack.c.bf16 %v1996_v61, %v1996_v61  ;;  %v2002_v5 = vpack.c.bf16 %v1998_v32, %v1998_v32 }
 0x437   :  { %v2001_v24 = vpack.c.bf16 %v1997_v34, %v1997_v34  ;;  %v2003_v62 = vpack.c.bf16 %v1999_v35, %v1999_v35 }
 0x439   :  { %2299 = vmatprep.mubr.bf16.mxu1 %v2001_v24  ;;  %2339 = vmatprep.mubr.bf16.mxu0 %v2003_v62 }
 0x43a   :  { %2300 = vmatmul.mubr.bf16.vlgmr.msra.gmra.mrb[16].mxu1 %v2000_v60  ;;  %2340 = vmatmul.mubr.bf16.vlgmr.msra.gmra.mrb[68].mxu0 %v2002_v5 }
 0x50d   :  { %v2691_v36 = vpop.f32.mrb[16].mxu1  ;;  %v2713_v19 = vpop.f32.mrb[68].mxu0 }
 0x50e   :  { %v2692_v37 = vpop.f32.mrb[17].mxu1  ;;  %v2714_v33 = vpop.f32.mrb[69].mxu0 }
 0x50f   :  { %v2693_v51 = vadd.f32 %v2692_v37, %v2691_v36  ;;  %v2715_v38 = vadd.f32 %v2714_v33, %v2713_v19  ;;  %v2694_v10 = vpop.f32.mrb[18].mxu1  ;;  %v2716_v20 = vpop.f32.mrb[70].mxu0 }
 0x510   :  { %v2695_v17 = vpop.f32.mrb[19].mxu1  ;;  %v2717_v43 = vpop.f32.mrb[71].mxu0 }
 0x511   :  { %v2302_v54 = vadd.f32 %v2693_v51, %v2556_v9 }
 0x513   :  { %v2342_v40 = vadd.f32 %v2715_v38, %v2302_v54 }
 0x515   :  { %2347 = vst [vmem:[%s4197_s10] sm:$0xff] %v2342_v40 }

</bundles_post_ra>
